<compile_context>
chip_gen: v7x
topology: tpu7x:2x2x1
jax: 0.10.0
libtpu: 0.0.40
codegen_flags: <defaults>
</compile_context>

<pallas_src>
import functools
import math

import jax
import jax.numpy as jnp
import numpy as np
from jax.experimental import pallas as pl
from jax.experimental.pallas import tpu as pltpu


# 3x3 taps with the centre (1,1) dropped: the '2sd' PDC transform zeroes that
# weight exactly, so it never contributes to the convolution.
_TAPS = [(kh, kw) for kh in range(3) for kw in range(3) if (kh, kw) != (1, 1)]
_LEFT = 128   # 128-aligned lane offset of each image inside its scratch segment


def _round_up(x, m):
    return ((x + m - 1) // m) * m


def _seg_len(H, W):
    """Per-batch segment length in the flat padded scratch, 128-aligned so the
    (C, H*W) image store of every batch element stays lane-aligned."""
    return _round_up(_LEFT + H * W + W + 1, 128)


# ----------------------------------------------------------------------------
# Parameter / constant construction (deterministic, matches the torch module)
# ----------------------------------------------------------------------------
def upsample_filt(size):
    factor = (size + 1) // 2
    center = factor - 1 if size % 2 == 1 else factor - 0.5
    og = np.ogrid[:size, :size]
    return (1 - abs(og[0] - center) / factor) * (1 - abs(og[1] - center) / factor)


def bilinear_upsample_weights(factor, num_classes):
    fs = 2 * factor - factor % 2
    w = np.zeros((num_classes, num_classes, fs, fs), dtype=np.float32)
    k = upsample_filt(fs)
    for i in range(num_classes):
        w[i, i, :, :] = k
    return jnp.asarray(w)            # conv_transpose layout: (Cin, Cout, fs, fs)


def kaiming_uniform_conv(key, out_ch, in_ch, k):
    # kaiming_uniform_(a=sqrt(5)) => bound = 1/sqrt(fan_in), fan_in = in_ch*k*k
    bound = 1.0 / math.sqrt(in_ch * k * k)
    return jax.random.uniform(key, (out_ch, in_ch, k, k), jnp.float32, -bound, bound)


def transform_2sd(w):
    """'2sd' PDC weight transform. (O, I, 3, 3) -> (O, I, 3, 3)."""
    O, I = w.shape[0], w.shape[1]
    wf = w.reshape(O, I, 9)
    idx = jnp.array([0, 1, 2, 3, 5, 6, 7, 8])
    pa = jnp.array([2, 7, 8, 5, 3, 0, 1, 6])
    pb = jnp.array([1, 4, 5, 4, 4, 3, 4, 7])
    new = wf.at[:, :, idx].set(wf[:, :, idx] + wf[:, :, pa] - 2.0 * wf[:, :, pb])
    new = new.at[:, :, 4].set(0.0)
    return new.reshape(O, I, 3, 3)


def conv_weight_to_mat(w):
    """(O, I, 3, 3) -> (O, 8*Cpad): tap-major (centre tap dropped), channel-minor;
    channels zero-padded to a multiple of 8 so the in-kernel im2col concat is
    sublane-aligned."""
    O, I = w.shape[0], w.shape[1]
    cpad = _round_up(I, 8)
    wt = jnp.transpose(w, (0, 2, 3, 1))                        # (O, 3, 3, I)
    wt = jnp.pad(wt, ((0, 0), (0, 0), (0, 0), (0, cpad - I)))
    cols = [wt[:, kh, kw, :] for (kh, kw) in _TAPS]            # 8 x (O, cpad)
    return jnp.concatenate(cols, axis=1)                       # (O, 8*cpad)


def _upsample_matrix_1d(out_size, in_size, factor):
    """Dense (out_size, in_size) matrix of a 1-D conv_transpose(stride=factor,
    padding=factor//2) with the bilinear kernel (output_padding implied by
    out_size)."""
    fs = 2 * factor - factor % 2
    half = (fs + 1) // 2
    center = half - 1 if fs % 2 == 1 else half - 0.5
    k1d = 1.0 - np.abs(np.arange(fs) - center) / half
    pad = factor // 2
    U = np.zeros((out_size, in_size), np.float32)
    for o in range(out_size):
        for i in range(in_size):
            t = o + pad - factor * i
            if 0 <= t < fs:
                U[o, i] = k1d[t]
    return U


def _upsample_kron_T(H1, W1, H2, W2, factor):
    """(H2*W2, H1*W1) matrix M with y2_flat @ M == conv_transpose2d(y2, bilinear,
    stride=factor, padding=factor//2, output_padding=...) flattened."""
    Uh = _upsample_matrix_1d(H1, H2, factor)
    Uw = _upsample_matrix_1d(W1, W2, factor)
    return np.kron(Uh, Uw).T.astype(np.float32)


def _col_masks(H, W):
    """(2, H*W) 0/1 masks: row 0 kills column j==0 (kw==0 taps), row 1 kills
    column j==W-1 (kw==2 taps) — replaces the W-direction zero padding."""
    j = np.arange(H * W) % W
    left = (j >= 1).astype(np.float32)
    right = (j <= W - 2).astype(np.float32)
    return np.stack([left, right], axis=0)


def init_params(key, in_channel, out_channel):
    k1, k2 = jax.random.split(key)
    w1_raw = kaiming_uniform_conv(k1, out_channel, in_channel[0], 3)
    w2_raw = kaiming_uniform_conv(k2, out_channel, in_channel[1], 3)
    return {
        "w1_raw": w1_raw,
        "w2_raw": w2_raw,
        # '2sd'-transformed weights in (Cout, 8*Cpad) matmul form (weights are
        # static at inference, so the PDC transform is precomputed once).
        "w1_mat": conv_weight_to_mat(transform_2sd(w1_raw)),
        "w2_mat": conv_weight_to_mat(transform_2sd(w2_raw)),
        # adap_conv gate parameters (torch init 0.0 -> sigmoid = 0.5)
        "gates": jnp.zeros((2,), jnp.float32),
    }


# ----------------------------------------------------------------------------
# Fused Pallas kernel (B = batch elements handled per grid step)
# ----------------------------------------------------------------------------
def _make_fused_kernel(B, C1, H1, W1, C2, H2, W2, Cout, eps=1e-5):
    cp1, cp2 = _round_up(C1, 8), _round_up(C2, 8)
    HW1, HW2 = H1 * W1, H2 * W2
    SEG1, SEG2 = _seg_len(H1, W1), _seg_len(H2, W2)

    def conv_branch(x_ref, w_ref, m_ref, scr_ref, C, cpad, H, W, SEG):
        """3x3 '2sd' conv of B images -> (Cout, B*HW) via ONE MXU contraction."""
        HW = H * W
        halo = W + 1
        # --- fill scratch: zero only the tap-reachable halos + padded rows ---
        zero_halo = jnp.zeros((cpad, halo), jnp.float32)
        for b in range(B):
            off = b * SEG + _LEFT
            scr_ref[:, off - halo:off] = zero_halo
            scr_ref[:, off + HW:off + HW + halo] = zero_halo
            if C < cpad:                       # padded channel rows must be zero
                scr_ref[C:cpad, off:off + HW] = jnp.zeros((cpad - C, HW),
                                                          jnp.float32)
            scr_ref[0:C, off:off + HW] = x_ref[b]
        # --- im2col: 8 lane-shifted slices (centre tap dropped) ---
        mask_l = m_ref[0:1, :]                 # kills column j == 0   (kw == 0)
        mask_r = m_ref[1:2, :]                 # kills column j == W-1 (kw == 2)
        tap_rows = []
        for kh, kw in _TAPS:
            segs = []
            for b in range(B):
                start = b * SEG + _LEFT - halo + kh * W + kw
                p = scr_ref[:, start:start + HW]              # (cpad, HW)
                if kw == 0:
                    p = p * mask_l
                elif kw == 2:
                    p = p * mask_r
                segs.append(p)
            tap_rows.append(segs[0] if B == 1 else jnp.concatenate(segs, axis=1))
        patches = jnp.concatenate(tap_rows, axis=0)           # (8*cpad, B*HW)
        return jnp.dot(w_ref[...], patches,
                       preferred_element_type=jnp.float32)    # (Cout, B*HW)

    def inorm_relu_gate(yb, gate, HW):
        # Two independent lane reductions (overlap on the XLUs), one-pass var,
        # sigmoid gate folded into the normalization scale.
        s1 = jnp.sum(yb, axis=1, keepdims=True)
        s2 = jnp.sum(yb * yb, axis=1, keepdims=True)
        mean = s1 * (1.0 / HW)
        var = jnp.maximum(s2 * (1.0 / HW) - mean * mean, 0.0)
        scale = jax.lax.rsqrt(var + eps) * gate
        return jnp.maximum((yb - mean) * scale, 0.0)

    def kernel(x1_ref, x2_ref, w1_ref, w2_ref, ukt_ref, m1_ref, m2_ref, g_ref,
               o_ref, s1_ref, s2_ref):
        y1 = conv_branch(x1_ref, w1_ref, m1_ref, s1_ref, C1, cp1, H1, W1, SEG1)
        y2 = conv_branch(x2_ref, w2_ref, m2_ref, s2_ref, C2, cp2, H2, W2, SEG2)
        g1, g2 = g_ref[0], g_ref[1]
        for b in range(B):                                    # static unroll
            y1b = inorm_relu_gate(y1[:, b * HW1:(b + 1) * HW1], g1, HW1)
            y2b = inorm_relu_gate(y2[:, b * HW2:(b + 1) * HW2], g2, HW2)
            # Bilinear conv_transpose (per-channel diagonal + separable) is one
            # small matmul against the precomputed kron(Uh, Uw)^T matrix.
            y2u = jnp.dot(y2b, ukt_ref[...], preferred_element_type=jnp.float32)
            o_ref[b] = (y1b + y2u).astype(o_ref.dtype)

    return kernel


def _tensorcores_per_device():
    """v7x exposes 2 TensorCores per chip to a 'parallel' Pallas grid; the other
    generations targeted here (v5e / v6e) are single-core."""
    try:
        kind = jax.devices()[0].device_kind.lower()
    except Exception:
        return 1
    return 2 if "v7" in kind else 1


def refine_block2_1_forward(params, x1_nchw, x2_nchw, factor,
                            *, force_batch_fold=None):
    N, C1, H1, W1 = x1_nchw.shape
    _, C2, H2, W2 = x2_nchw.shape
    Cout = params["w1_mat"].shape[0]
    HW1, HW2 = H1 * W1, H2 * W2
    cp1, cp2 = _round_up(C1, 8), _round_up(C2, 8)

    # Batch strategy: fold all batch elements into one grid step on single-TC
    # chips (v5e/v6e); keep a per-batch "parallel" grid on multi-TC chips (v7x).
    if force_batch_fold is None:
        fold = (_tensorcores_per_device() < 2) or (N == 1)
    else:
        fold = bool(force_batch_fold)
    B = N if fold else 1
    G = N // B
    # TODO(synk): for N==1 on v7x, a branch-per-core split would use both TCs.

    # Trace-time constants (depend only on static shapes / factor).
    ukt = jnp.asarray(_upsample_kron_T(H1, W1, H2, W2, factor))   # (HW2, HW1)
    m1 = jnp.asarray(_col_masks(H1, W1))                          # (2, HW1)
    m2 = jnp.asarray(_col_masks(H2, W2))                          # (2, HW2)
    gates = jax.nn.sigmoid(params["gates"])                       # (2,) traced

    kernel = _make_fused_kernel(B, C1, H1, W1, C2, H2, W2, Cout)
    SEG1, SEG2 = _seg_len(H1, W1), _seg_len(H2, W2)

    out_flat = pl.pallas_call(
        kernel,
        out_shape=jax.ShapeDtypeStruct((N, Cout, HW1), jnp.float32),
        grid=(G,),
        in_specs=[
            pl.BlockSpec((B, C1, HW1), lambda g: (g, 0, 0)),
            pl.BlockSpec((B, C2, HW2), lambda g: (g, 0, 0)),
            pl.BlockSpec((Cout, len(_TAPS) * cp1), lambda g: (0, 0)),
            pl.BlockSpec((Cout, len(_TAPS) * cp2), lambda g: (0, 0)),
            pl.BlockSpec((HW2, HW1), lambda g: (0, 0)),
            pl.BlockSpec((2, HW1), lambda g: (0, 0)),
            pl.BlockSpec((2, HW2), lambda g: (0, 0)),
            pl.BlockSpec(memory_space=pltpu.MemorySpace.SMEM),    # gates
        ],
        out_specs=pl.BlockSpec((B, Cout, HW1), lambda g: (g, 0, 0)),
        scratch_shapes=[
            pltpu.VMEM((cp1, B * SEG1), jnp.float32),
            pltpu.VMEM((cp2, B * SEG2), jnp.float32),
        ],
        compiler_params=pltpu.CompilerParams(
            dimension_semantics=("parallel",)),
    )(
        x1_nchw.reshape(N, C1, HW1),   # free bitcasts, stay channel-major
        x2_nchw.reshape(N, C2, HW2),
        params["w1_mat"], params["w2_mat"],
        ukt, m1, m2, gates,
    )
    return out_flat.reshape(N, Cout, H1, W1)


# ----------------------------------------------------------------------------
# Pure-JAX reference (sanity check of the fused kernel)
# ----------------------------------------------------------------------------
def reference_forward(params, x1_nchw, x2_nchw, factor):
    conv = functools.partial(
        jax.lax.conv_general_dilated,
        dimension_numbers=("NCHW", "OIHW", "NCHW"),
        precision=jax.lax.Precision.HIGHEST,
    )
    g = jax.nn.sigmoid(params["gates"])

    def adap(x, w_raw, gate):
        w = transform_2sd(w_raw)
        y = conv(x, w, window_strides=(1, 1), padding=((1, 1), (1, 1)))
        mean = jnp.mean(y, axis=(2, 3), keepdims=True)
        var = jnp.mean((y - mean) ** 2, axis=(2, 3), keepdims=True)
        y = (y - mean) * jax.lax.rsqrt(var + 1e-5)
        return jnp.maximum(y, 0.0) * gate

    y1 = adap(x1_nchw, params["w1_raw"], g[0])
    y2 = adap(x2_nchw, params["w2_raw"], g[1])

    Cout = y1.shape[1]
    fs = 2 * factor - factor % 2
    p = factor // 2
    op_h = y1.shape[2] - y2.shape[2] * factor
    op_w = y1.shape[3] - y2.shape[3] * factor
    w_t = bilinear_upsample_weights(factor, Cout)          # (Cin, Cout, fs, fs)
    w_conv = jnp.flip(jnp.transpose(w_t, (1, 0, 2, 3)), axis=(2, 3))
    y2u = conv(y2, w_conv, window_strides=(1, 1),
               padding=((fs - 1 - p, fs - 1 - p + op_h),
                        (fs - 1 - p, fs - 1 - p + op_w)),
               lhs_dilation=(factor, factor))
    return y1 + y2u


# ----------------------------------------------------------------------------
if __name__ == "__main__":
    in_channel = (4, 8)
    out_channel = 8
    factor = 2

    key = jax.random.PRNGKey(0)
    kp, kx1, kx2 = jax.random.split(key, 3)
    params = init_params(kp, in_channel, out_channel)

    # input[0]: high-res feature map, input[1]: low-res feature map (NCHW)
    x1 = jax.random.normal(kx1, (2, in_channel[0], 16, 16), jnp.float32)
    x2 = jax.random.normal(kx2, (2, in_channel[1], 8, 8), jnp.float32)

    ref = jax.block_until_ready(reference_forward(params, x1, x2, factor))

    # Default path (grid strategy picked from the device generation).
    fwd = jax.jit(functools.partial(refine_block2_1_forward, factor=factor))
    out = jax.block_until_ready(fwd(params, x1, x2))
    assert out.shape == (2, out_channel, 16, 16), out.shape
    np.testing.assert_allclose(np.asarray(out), np.asarray(ref),
                               atol=2e-3, rtol=2e-3)

    # Validate BOTH grid strategies (batch-folded single step, and per-batch
    # "parallel" grid) so either device mapping is known-correct.
    for fold in (True, False):
        f = jax.jit(functools.partial(refine_block2_1_forward, factor=factor,
                                      force_batch_fold=fold))
        o = jax.block_until_ready(f(params, x1, x2))
        np.testing.assert_allclose(np.asarray(o), np.asarray(ref),
                                   atol=2e-3, rtol=2e-3)

    print("KERNEL_OK")
</pallas_src>

<mosaic_0001>
module attributes {stable_mosaic.version = 11 : i64} {
  func.func @kernel(%arg0: i32, %arg1: memref<2x4x256xf32, #tpu.memory_space<vmem>>, %arg2: memref<2x8x64xf32, #tpu.memory_space<vmem>>, %arg3: memref<8x64xf32, #tpu.memory_space<vmem>>, %arg4: memref<8x64xf32, #tpu.memory_space<vmem>>, %arg5: memref<64x256xf32, #tpu.memory_space<vmem>>, %arg6: memref<2x256xf32, #tpu.memory_space<vmem>>, %arg7: memref<2x64xf32, #tpu.memory_space<vmem>>, %arg8: memref<2xf32, #tpu.memory_space<smem>>, %arg9: memref<2x8x256xf32, #tpu.memory_space<vmem>>, %arg10: memref<8x1024xf32, #tpu.memory_space<vmem>>, %arg11: memref<8x512xf32, #tpu.memory_space<vmem>>) attributes {dimension_semantics = [#tpu.dimension_semantics<parallel>], iteration_bounds = array<i64: 1>, scalar_prefetch = 0 : i64, scratch_operands = 2 : i64, tpu.core_type = #tpu.core_type<tc>, window_params = [{transform_indices = @transform_0, window_bounds = array<i64: 2, 4, 256>}, {transform_indices = @transform_1, window_bounds = array<i64: 2, 8, 64>}, {pipeline_mode = #tpu.pipeline_mode<synchronous>, transform_indices = @transform_2, window_bounds = array<i64: 8, 64>}, {pipeline_mode = #tpu.pipeline_mode<synchronous>, transform_indices = @transform_3, window_bounds = array<i64: 8, 64>}, {pipeline_mode = #tpu.pipeline_mode<synchronous>, transform_indices = @transform_4, window_bounds = array<i64: 64, 256>}, {pipeline_mode = #tpu.pipeline_mode<synchronous>, transform_indices = @transform_5, window_bounds = array<i64: 2, 256>}, {pipeline_mode = #tpu.pipeline_mode<synchronous>, transform_indices = @transform_6, window_bounds = array<i64: 2, 64>}, {transform_indices = @transform_7, window_bounds = array<i64: 2>}, {transform_indices = @transform_8, window_bounds = array<i64: 2, 8, 256>}]} {
    %cst = arith.constant 0.000000e+00 : f32
    %0 = vector.broadcast %cst : f32 to vector<8x17xf32>
    %c0 = arith.constant 0 : index
    %c111 = arith.constant 111 : index
    %1 = vector.load %arg10[%c0, %c111] : memref<8x1024xf32, #tpu.memory_space<vmem>>, vector<8x17xf32>
    tpu.vector_store %arg10[%c0, %c111], %0 {strides = array<i32>} : memref<8x1024xf32, #tpu.memory_space<vmem>>, vector<8x17xf32>,
    %c0_0 = arith.constant 0 : index
    %c384 = arith.constant 384 : index
    %2 = vector.load %arg10[%c0_0, %c384] : memref<8x1024xf32, #tpu.memory_space<vmem>>, vector<8x17xf32>
    tpu.vector_store %arg10[%c0_0, %c384], %0 {strides = array<i32>} : memref<8x1024xf32, #tpu.memory_space<vmem>>, vector<8x17xf32>,
    %cst_1 = arith.constant 0.000000e+00 : f32
    %3 = vector.broadcast %cst_1 : f32 to vector<4x256xf32>
    %c4 = arith.constant 4 : index
    %c128 = arith.constant 128 : index
    %4 = vector.load %arg10[%c4, %c128] : memref<8x1024xf32, #tpu.memory_space<vmem>>, vector<4x256xf32>
    tpu.vector_store %arg10[%c4, %c128], %3 {strides = array<i32>} : memref<8x1024xf32, #tpu.memory_space<vmem>>, vector<4x256xf32>,
    %c0_2 = arith.constant 0 : index
    %c0_3 = arith.constant 0 : index
    %c0_4 = arith.constant 0 : index
    %5 = vector.load %arg1[%c0_2, %c0_3, %c0_4] : memref<2x4x256xf32, #tpu.memory_space<vmem>>, vector<1x4x256xf32>
    %6 = vector.shape_cast %5 : vector<1x4x256xf32> to vector<4x256xf32>
    %c0_5 = arith.constant 0 : index
    %c128_6 = arith.constant 128 : index
    %7 = vector.load %arg10[%c0_5, %c128_6] : memref<8x1024xf32, #tpu.memory_space<vmem>>, vector<4x256xf32>
    tpu.vector_store %arg10[%c0_5, %c128_6], %6 {strides = array<i32>} : memref<8x1024xf32, #tpu.memory_space<vmem>>, vector<4x256xf32>,
    %c0_7 = arith.constant 0 : index
    %c623 = arith.constant 623 : index
    %8 = vector.load %arg10[%c0_7, %c623] : memref<8x1024xf32, #tpu.memory_space<vmem>>, vector<8x17xf32>
    tpu.vector_store %arg10[%c0_7, %c623], %0 {strides = array<i32>} : memref<8x1024xf32, #tpu.memory_space<vmem>>, vector<8x17xf32>,
    %c0_8 = arith.constant 0 : index
    %c896 = arith.constant 896 : index
    %9 = vector.load %arg10[%c0_8, %c896] : memref<8x1024xf32, #tpu.memory_space<vmem>>, vector<8x17xf32>
    tpu.vector_store %arg10[%c0_8, %c896], %0 {strides = array<i32>} : memref<8x1024xf32, #tpu.memory_space<vmem>>, vector<8x17xf32>,
    %cst_9 = arith.constant 0.000000e+00 : f32
    %10 = vector.broadcast %cst_9 : f32 to vector<4x256xf32>
    %c4_10 = arith.constant 4 : index
    %c640 = arith.constant 640 : index
    %11 = vector.load %arg10[%c4_10, %c640] : memref<8x1024xf32, #tpu.memory_space<vmem>>, vector<4x256xf32>
    tpu.vector_store %arg10[%c4_10, %c640], %10 {strides = array<i32>} : memref<8x1024xf32, #tpu.memory_space<vmem>>, vector<4x256xf32>,
    %c1 = arith.constant 1 : index
    %c0_11 = arith.constant 0 : index
    %c0_12 = arith.constant 0 : index
    %12 = vector.load %arg1[%c1, %c0_11, %c0_12] : memref<2x4x256xf32, #tpu.memory_space<vmem>>, vector<1x4x256xf32>
    %13 = vector.shape_cast %12 : vector<1x4x256xf32> to vector<4x256xf32>
    %c0_13 = arith.constant 0 : index
    %c640_14 = arith.constant 640 : index
    %14 = vector.load %arg10[%c0_13, %c640_14] : memref<8x1024xf32, #tpu.memory_space<vmem>>, vector<4x256xf32>
    tpu.vector_store %arg10[%c0_13, %c640_14], %13 {strides = array<i32>} : memref<8x1024xf32, #tpu.memory_space<vmem>>, vector<4x256xf32>,
    %c0_15 = arith.constant 0 : index
    %c0_16 = arith.constant 0 : index
    %15 = vector.load %arg6[%c0_15, %c0_16] : memref<2x256xf32, #tpu.memory_space<vmem>>, vector<1x256xf32>
    %c1_17 = arith.constant 1 : index
    %c0_18 = arith.constant 0 : index
    %16 = vector.load %arg6[%c1_17, %c0_18] : memref<2x256xf32, #tpu.memory_space<vmem>>, vector<1x256xf32>
    %c0_19 = arith.constant 0 : index
    %c111_20 = arith.constant 111 : index
    %17 = vector.load %arg10[%c0_19, %c111_20] : memref<8x1024xf32, #tpu.memory_space<vmem>>, vector<8x256xf32>
    %18 = vector.broadcast %15 : vector<1x256xf32> to vector<8x256xf32>
    %19 = arith.mulf %17, %18 : vector<8x256xf32>
    %c0_21 = arith.constant 0 : index
    %c623_22 = arith.constant 623 : index
    %20 = vector.load %arg10[%c0_21, %c623_22] : memref<8x1024xf32, #tpu.memory_space<vmem>>, vector<8x256xf32>
    %21 = vector.broadcast %15 : vector<1x256xf32> to vector<8x256xf32>
    %22 = arith.mulf %20, %21 : vector<8x256xf32>
    %23 = tpu.concatenate %19, %22 in 1 : vector<8x256xf32>, vector<8x256xf32> -> vector<8x512xf32>
    %c0_23 = arith.constant 0 : index
    %c112 = arith.constant 112 : index
    %24 = vector.load %arg10[%c0_23, %c112] : memref<8x1024xf32, #tpu.memory_space<vmem>>, vector<8x256xf32>
    %c0_24 = arith.constant 0 : index
    %c624 = arith.constant 624 : index
    %25 = vector.load %arg10[%c0_24, %c624] : memref<8x1024xf32, #tpu.memory_space<vmem>>, vector<8x256xf32>
    %26 = tpu.concatenate %24, %25 in 1 : vector<8x256xf32>, vector<8x256xf32> -> vector<8x512xf32>
    %c0_25 = arith.constant 0 : index
    %c113 = arith.constant 113 : index
    %27 = vector.load %arg10[%c0_25, %c113] : memref<8x1024xf32, #tpu.memory_space<vmem>>, vector<8x256xf32>
    %28 = vector.broadcast %16 : vector<1x256xf32> to vector<8x256xf32>
    %29 = arith.mulf %27, %28 : vector<8x256xf32>
    %c0_26 = arith.constant 0 : index
    %c625 = arith.constant 625 : index
    %30 = vector.load %arg10[%c0_26, %c625] : memref<8x1024xf32, #tpu.memory_space<vmem>>, vector<8x256xf32>
    %31 = vector.broadcast %16 : vector<1x256xf32> to vector<8x256xf32>
    %32 = arith.mulf %30, %31 : vector<8x256xf32>
    %33 = tpu.concatenate %29, %32 in 1 : vector<8x256xf32>, vector<8x256xf32> -> vector<8x512xf32>
    %c0_27 = arith.constant 0 : index
    %c127 = arith.constant 127 : index
    %34 = vector.load %arg10[%c0_27, %c127] : memref<8x1024xf32, #tpu.memory_space<vmem>>, vector<8x256xf32>
    %35 = vector.broadcast %15 : vector<1x256xf32> to vector<8x256xf32>
    %36 = arith.mulf %34, %35 : vector<8x256xf32>
    %c0_28 = arith.constant 0 : index
    %c639 = arith.constant 639 : index
    %37 = vector.load %arg10[%c0_28, %c639] : memref<8x1024xf32, #tpu.memory_space<vmem>>, vector<8x256xf32>
    %38 = vector.broadcast %15 : vector<1x256xf32> to vector<8x256xf32>
    %39 = arith.mulf %37, %38 : vector<8x256xf32>
    %40 = tpu.concatenate %36, %39 in 1 : vector<8x256xf32>, vector<8x256xf32> -> vector<8x512xf32>
    %c0_29 = arith.constant 0 : index
    %c129 = arith.constant 129 : index
    %41 = vector.load %arg10[%c0_29, %c129] : memref<8x1024xf32, #tpu.memory_space<vmem>>, vector<8x256xf32>
    %42 = vector.broadcast %16 : vector<1x256xf32> to vector<8x256xf32>
    %43 = arith.mulf %41, %42 : vector<8x256xf32>
    %c0_30 = arith.constant 0 : index
    %c641 = arith.constant 641 : index
    %44 = vector.load %arg10[%c0_30, %c641] : memref<8x1024xf32, #tpu.memory_space<vmem>>, vector<8x256xf32>
    %45 = vector.broadcast %16 : vector<1x256xf32> to vector<8x256xf32>
    %46 = arith.mulf %44, %45 : vector<8x256xf32>
    %47 = tpu.concatenate %43, %46 in 1 : vector<8x256xf32>, vector<8x256xf32> -> vector<8x512xf32>
    %c0_31 = arith.constant 0 : index
    %c143 = arith.constant 143 : index
    %48 = vector.load %arg10[%c0_31, %c143] : memref<8x1024xf32, #tpu.memory_space<vmem>>, vector<8x256xf32>
    %49 = vector.broadcast %15 : vector<1x256xf32> to vector<8x256xf32>
    %50 = arith.mulf %48, %49 : vector<8x256xf32>
    %c0_32 = arith.constant 0 : index
    %c655 = arith.constant 655 : index
    %51 = vector.load %arg10[%c0_32, %c655] : memref<8x1024xf32, #tpu.memory_space<vmem>>, vector<8x256xf32>
    %52 = vector.broadcast %15 : vector<1x256xf32> to vector<8x256xf32>
    %53 = arith.mulf %51, %52 : vector<8x256xf32>
    %54 = tpu.concatenate %50, %53 in 1 : vector<8x256xf32>, vector<8x256xf32> -> vector<8x512xf32>
    %c0_33 = arith.constant 0 : index
    %c144 = arith.constant 144 : index
    %55 = vector.load %arg10[%c0_33, %c144] : memref<8x1024xf32, #tpu.memory_space<vmem>>, vector<8x256xf32>
    %c0_34 = arith.constant 0 : index
    %c656 = arith.constant 656 : index
    %56 = vector.load %arg10[%c0_34, %c656] : memref<8x1024xf32, #tpu.memory_space<vmem>>, vector<8x256xf32>
    %57 = tpu.concatenate %55, %56 in 1 : vector<8x256xf32>, vector<8x256xf32> -> vector<8x512xf32>
    %c0_35 = arith.constant 0 : index
    %c145 = arith.constant 145 : index
    %58 = vector.load %arg10[%c0_35, %c145] : memref<8x1024xf32, #tpu.memory_space<vmem>>, vector<8x256xf32>
    %59 = vector.broadcast %16 : vector<1x256xf32> to vector<8x256xf32>
    %60 = arith.mulf %58, %59 : vector<8x256xf32>
    %c0_36 = arith.constant 0 : index
    %c657 = arith.constant 657 : index
    %61 = vector.load %arg10[%c0_36, %c657] : memref<8x1024xf32, #tpu.memory_space<vmem>>, vector<8x256xf32>
    %62 = vector.broadcast %16 : vector<1x256xf32> to vector<8x256xf32>
    %63 = arith.mulf %61, %62 : vector<8x256xf32>
    %64 = tpu.concatenate %60, %63 in 1 : vector<8x256xf32>, vector<8x256xf32> -> vector<8x512xf32>
    %65 = tpu.concatenate %23, %26, %33, %40, %47, %54, %57, %64 in 0 : vector<8x512xf32>, vector<8x512xf32>, vector<8x512xf32>, vector<8x512xf32>, vector<8x512xf32>, vector<8x512xf32>, vector<8x512xf32>, vector<8x512xf32> -> vector<64x512xf32>
    %c0_37 = arith.constant 0 : index
    %c0_38 = arith.constant 0 : index
    %66 = vector.load %arg3[%c0_37, %c0_38] : memref<8x64xf32, #tpu.memory_space<vmem>>, vector<8x64xf32>
    %cst_39 = arith.constant dense<0.000000e+00> : vector<8x512xf32>
    %67 = tpu.matmul %66, %65, %cst_39 {dimension_numbers = #tpu.dot_dimension_numbers<[1], [0], [0], [1], [0, 0, 1, 1], [], []>} : vector<8x64xf32>, vector<64x512xf32>, vector<8x512xf32> -> vector<8x512xf32>
    %cst_40 = arith.constant 0.000000e+00 : f32
    %68 = vector.broadcast %cst_40 : f32 to vector<8x9xf32>
    %c0_41 = arith.constant 0 : index
    %c119 = arith.constant 119 : index
    %69 = vector.load %arg11[%c0_41, %c119] : memref<8x512xf32, #tpu.memory_space<vmem>>, vector<8x9xf32>
    tpu.vector_store %arg11[%c0_41, %c119], %68 {strides = array<i32>} : memref<8x512xf32, #tpu.memory_space<vmem>>, vector<8x9xf32>,
    %c0_42 = arith.constant 0 : index
    %c192 = arith.constant 192 : index
    %70 = vector.load %arg11[%c0_42, %c192] : memref<8x512xf32, #tpu.memory_space<vmem>>, vector<8x9xf32>
    tpu.vector_store %arg11[%c0_42, %c192], %68 {strides = array<i32>} : memref<8x512xf32, #tpu.memory_space<vmem>>, vector<8x9xf32>,
    %c0_43 = arith.constant 0 : index
    %c0_44 = arith.constant 0 : index
    %c0_45 = arith.constant 0 : index
    %71 = vector.load %arg2[%c0_43, %c0_44, %c0_45] : memref<2x8x64xf32, #tpu.memory_space<vmem>>, vector<1x8x64xf32>
    %72 = vector.shape_cast %71 : vector<1x8x64xf32> to vector<8x64xf32>
    %c0_46 = arith.constant 0 : index
    %c128_47 = arith.constant 128 : index
    %73 = vector.load %arg11[%c0_46, %c128_47] : memref<8x512xf32, #tpu.memory_space<vmem>>, vector<8x64xf32>
    tpu.vector_store %arg11[%c0_46, %c128_47], %72 {strides = array<i32>} : memref<8x512xf32, #tpu.memory_space<vmem>>, vector<8x64xf32>,
    %c0_48 = arith.constant 0 : index
    %c375 = arith.constant 375 : index
    %74 = vector.load %arg11[%c0_48, %c375] : memref<8x512xf32, #tpu.memory_space<vmem>>, vector<8x9xf32>
    tpu.vector_store %arg11[%c0_48, %c375], %68 {strides = array<i32>} : memref<8x512xf32, #tpu.memory_space<vmem>>, vector<8x9xf32>,
    %c0_49 = arith.constant 0 : index
    %c448 = arith.constant 448 : index
    %75 = vector.load %arg11[%c0_49, %c448] : memref<8x512xf32, #tpu.memory_space<vmem>>, vector<8x9xf32>
    tpu.vector_store %arg11[%c0_49, %c448], %68 {strides = array<i32>} : memref<8x512xf32, #tpu.memory_space<vmem>>, vector<8x9xf32>,
    %c1_50 = arith.constant 1 : index
    %c0_51 = arith.constant 0 : index
    %c0_52 = arith.constant 0 : index
    %76 = vector.load %arg2[%c1_50, %c0_51, %c0_52] : memref<2x8x64xf32, #tpu.memory_space<vmem>>, vector<1x8x64xf32>
    %77 = vector.shape_cast %76 : vector<1x8x64xf32> to vector<8x64xf32>
    %c0_53 = arith.constant 0 : index
    %c384_54 = arith.constant 384 : index
    %78 = vector.load %arg11[%c0_53, %c384_54] : memref<8x512xf32, #tpu.memory_space<vmem>>, vector<8x64xf32>
    tpu.vector_store %arg11[%c0_53, %c384_54], %77 {strides = array<i32>} : memref<8x512xf32, #tpu.memory_space<vmem>>, vector<8x64xf32>,
    %c0_55 = arith.constant 0 : index
    %c0_56 = arith.constant 0 : index
    %79 = vector.load %arg7[%c0_55, %c0_56] : memref<2x64xf32, #tpu.memory_space<vmem>>, vector<1x64xf32>
    %c1_57 = arith.constant 1 : index
    %c0_58 = arith.constant 0 : index
    %80 = vector.load %arg7[%c1_57, %c0_58] : memref<2x64xf32, #tpu.memory_space<vmem>>, vector<1x64xf32>
    %c0_59 = arith.constant 0 : index
    %c119_60 = arith.constant 119 : index
    %81 = vector.load %arg11[%c0_59, %c119_60] : memref<8x512xf32, #tpu.memory_space<vmem>>, vector<8x64xf32>
    %82 = vector.broadcast %79 : vector<1x64xf32> to vector<8x64xf32>
    %83 = arith.mulf %81, %82 : vector<8x64xf32>
    %c0_61 = arith.constant 0 : index
    %c375_62 = arith.constant 375 : index
    %84 = vector.load %arg11[%c0_61, %c375_62] : memref<8x512xf32, #tpu.memory_space<vmem>>, vector<8x64xf32>
    %85 = vector.broadcast %79 : vector<1x64xf32> to vector<8x64xf32>
    %86 = arith.mulf %84, %85 : vector<8x64xf32>
    %87 = tpu.concatenate %83, %86 in 1 : vector<8x64xf32>, vector<8x64xf32> -> vector<8x128xf32>
    %c0_63 = arith.constant 0 : index
    %c120 = arith.constant 120 : index
    %88 = vector.load %arg11[%c0_63, %c120] : memref<8x512xf32, #tpu.memory_space<vmem>>, vector<8x64xf32>
    %c0_64 = arith.constant 0 : index
    %c376 = arith.constant 376 : index
    %89 = vector.load %arg11[%c0_64, %c376] : memref<8x512xf32, #tpu.memory_space<vmem>>, vector<8x64xf32>
    %90 = tpu.concatenate %88, %89 in 1 : vector<8x64xf32>, vector<8x64xf32> -> vector<8x128xf32>
    %c0_65 = arith.constant 0 : index
    %c121 = arith.constant 121 : index
    %91 = vector.load %arg11[%c0_65, %c121] : memref<8x512xf32, #tpu.memory_space<vmem>>, vector<8x64xf32>
    %92 = vector.broadcast %80 : vector<1x64xf32> to vector<8x64xf32>
    %93 = arith.mulf %91, %92 : vector<8x64xf32>
    %c0_66 = arith.constant 0 : index
    %c377 = arith.constant 377 : index
    %94 = vector.load %arg11[%c0_66, %c377] : memref<8x512xf32, #tpu.memory_space<vmem>>, vector<8x64xf32>
    %95 = vector.broadcast %80 : vector<1x64xf32> to vector<8x64xf32>
    %96 = arith.mulf %94, %95 : vector<8x64xf32>
    %97 = tpu.concatenate %93, %96 in 1 : vector<8x64xf32>, vector<8x64xf32> -> vector<8x128xf32>
    %c0_67 = arith.constant 0 : index
    %c127_68 = arith.constant 127 : index
    %98 = vector.load %arg11[%c0_67, %c127_68] : memref<8x512xf32, #tpu.memory_space<vmem>>, vector<8x64xf32>
    %99 = vector.broadcast %79 : vector<1x64xf32> to vector<8x64xf32>
    %100 = arith.mulf %98, %99 : vector<8x64xf32>
    %c0_69 = arith.constant 0 : index
    %c383 = arith.constant 383 : index
    %101 = vector.load %arg11[%c0_69, %c383] : memref<8x512xf32, #tpu.memory_space<vmem>>, vector<8x64xf32>
    %102 = vector.broadcast %79 : vector<1x64xf32> to vector<8x64xf32>
    %103 = arith.mulf %101, %102 : vector<8x64xf32>
    %104 = tpu.concatenate %100, %103 in 1 : vector<8x64xf32>, vector<8x64xf32> -> vector<8x128xf32>
    %c0_70 = arith.constant 0 : index
    %c129_71 = arith.constant 129 : index
    %105 = vector.load %arg11[%c0_70, %c129_71] : memref<8x512xf32, #tpu.memory_space<vmem>>, vector<8x64xf32>
    %106 = vector.broadcast %80 : vector<1x64xf32> to vector<8x64xf32>
    %107 = arith.mulf %105, %106 : vector<8x64xf32>
    %c0_72 = arith.constant 0 : index
    %c385 = arith.constant 385 : index
    %108 = vector.load %arg11[%c0_72, %c385] : memref<8x512xf32, #tpu.memory_space<vmem>>, vector<8x64xf32>
    %109 = vector.broadcast %80 : vector<1x64xf32> to vector<8x64xf32>
    %110 = arith.mulf %108, %109 : vector<8x64xf32>
    %111 = tpu.concatenate %107, %110 in 1 : vector<8x64xf32>, vector<8x64xf32> -> vector<8x128xf32>
    %c0_73 = arith.constant 0 : index
    %c135 = arith.constant 135 : index
    %112 = vector.load %arg11[%c0_73, %c135] : memref<8x512xf32, #tpu.memory_space<vmem>>, vector<8x64xf32>
    %113 = vector.broadcast %79 : vector<1x64xf32> to vector<8x64xf32>
    %114 = arith.mulf %112, %113 : vector<8x64xf32>
    %c0_74 = arith.constant 0 : index
    %c391 = arith.constant 391 : index
    %115 = vector.load %arg11[%c0_74, %c391] : memref<8x512xf32, #tpu.memory_space<vmem>>, vector<8x64xf32>
    %116 = vector.broadcast %79 : vector<1x64xf32> to vector<8x64xf32>
    %117 = arith.mulf %115, %116 : vector<8x64xf32>
    %118 = tpu.concatenate %114, %117 in 1 : vector<8x64xf32>, vector<8x64xf32> -> vector<8x128xf32>
    %c0_75 = arith.constant 0 : index
    %c136 = arith.constant 136 : index
    %119 = vector.load %arg11[%c0_75, %c136] : memref<8x512xf32, #tpu.memory_space<vmem>>, vector<8x64xf32>
    %c0_76 = arith.constant 0 : index
    %c392 = arith.constant 392 : index
    %120 = vector.load %arg11[%c0_76, %c392] : memref<8x512xf32, #tpu.memory_space<vmem>>, vector<8x64xf32>
    %121 = tpu.concatenate %119, %120 in 1 : vector<8x64xf32>, vector<8x64xf32> -> vector<8x128xf32>
    %c0_77 = arith.constant 0 : index
    %c137 = arith.constant 137 : index
    %122 = vector.load %arg11[%c0_77, %c137] : memref<8x512xf32, #tpu.memory_space<vmem>>, vector<8x64xf32>
    %123 = vector.broadcast %80 : vector<1x64xf32> to vector<8x64xf32>
    %124 = arith.mulf %122, %123 : vector<8x64xf32>
    %c0_78 = arith.constant 0 : index
    %c393 = arith.constant 393 : index
    %125 = vector.load %arg11[%c0_78, %c393] : memref<8x512xf32, #tpu.memory_space<vmem>>, vector<8x64xf32>
    %126 = vector.broadcast %80 : vector<1x64xf32> to vector<8x64xf32>
    %127 = arith.mulf %125, %126 : vector<8x64xf32>
    %128 = tpu.concatenate %124, %127 in 1 : vector<8x64xf32>, vector<8x64xf32> -> vector<8x128xf32>
    %129 = tpu.concatenate %87, %90, %97, %104, %111, %118, %121, %128 in 0 : vector<8x128xf32>, vector<8x128xf32>, vector<8x128xf32>, vector<8x128xf32>, vector<8x128xf32>, vector<8x128xf32>, vector<8x128xf32>, vector<8x128xf32> -> vector<64x128xf32>
    %c0_79 = arith.constant 0 : index
    %c0_80 = arith.constant 0 : index
    %130 = vector.load %arg4[%c0_79, %c0_80] : memref<8x64xf32, #tpu.memory_space<vmem>>, vector<8x64xf32>
    %cst_81 = arith.constant dense<0.000000e+00> : vector<8x128xf32>
    %131 = tpu.matmul %130, %129, %cst_81 {dimension_numbers = #tpu.dot_dimension_numbers<[1], [0], [0], [1], [0, 0, 1, 1], [], []>} : vector<8x64xf32>, vector<64x128xf32>, vector<8x128xf32> -> vector<8x128xf32>
    %c0_82 = arith.constant 0 : index
    %132 = memref.load %arg8[%c0_82] : memref<2xf32, #tpu.memory_space<smem>>
    %c1_83 = arith.constant 1 : index
    %133 = memref.load %arg8[%c1_83] : memref<2xf32, #tpu.memory_space<smem>>
    %134 = vector.extract_strided_slice %67 {offsets = [0, 0], sizes = [8, 256], strides = [1, 1]} : vector<8x512xf32> to vector<8x256xf32>
    %cst_84 = arith.constant dense<0.000000e+00> : vector<8xf32>
    %135 = vector.multi_reduction <add>, %134, %cst_84 [1] : vector<8x256xf32> to vector<8xf32>
    %136 = vector.shape_cast %135 : vector<8xf32> to vector<8x1xf32>
    %137 = arith.mulf %134, %134 : vector<8x256xf32>
    %cst_85 = arith.constant dense<0.000000e+00> : vector<8xf32>
    %138 = vector.multi_reduction <add>, %137, %cst_85 [1] : vector<8x256xf32> to vector<8xf32>
    %139 = vector.shape_cast %138 : vector<8xf32> to vector<8x1xf32>
    %cst_86 = arith.constant 3.906250e-03 : f32
    %140 = vector.broadcast %cst_86 : f32 to vector<8x1xf32>
    %141 = arith.mulf %136, %140 : vector<8x1xf32>
    %cst_87 = arith.constant 3.906250e-03 : f32
    %142 = vector.broadcast %cst_87 : f32 to vector<8x1xf32>
    %143 = arith.mulf %139, %142 : vector<8x1xf32>
    %144 = arith.mulf %141, %141 : vector<8x1xf32>
    %145 = arith.subf %143, %144 : vector<8x1xf32>
    %cst_88 = arith.constant 0.000000e+00 : f32
    %146 = vector.broadcast %cst_88 : f32 to vector<8x1xf32>
    %147 = arith.maximumf %145, %146 : vector<8x1xf32>
    %cst_89 = arith.constant 9.99999974E-6 : f32
    %148 = vector.broadcast %cst_89 : f32 to vector<8x1xf32>
    %149 = arith.addf %147, %148 : vector<8x1xf32>
    %150 = math.rsqrt %149 : vector<8x1xf32>
    %151 = vector.broadcast %132 : f32 to vector<8x1xf32>
    %152 = arith.mulf %150, %151 : vector<8x1xf32>
    %153 = vector.broadcast %141 : vector<8x1xf32> to vector<8x256xf32>
    %154 = arith.subf %134, %153 : vector<8x256xf32>
    %155 = vector.broadcast %152 : vector<8x1xf32> to vector<8x256xf32>
    %156 = arith.mulf %154, %155 : vector<8x256xf32>
    %cst_90 = arith.constant 0.000000e+00 : f32
    %157 = vector.broadcast %cst_90 : f32 to vector<8x256xf32>
    %158 = arith.maximumf %156, %157 : vector<8x256xf32>
    %159 = vector.extract_strided_slice %131 {offsets = [0, 0], sizes = [8, 64], strides = [1, 1]} : vector<8x128xf32> to vector<8x64xf32>
    %cst_91 = arith.constant dense<0.000000e+00> : vector<8xf32>
    %160 = vector.multi_reduction <add>, %159, %cst_91 [1] : vector<8x64xf32> to vector<8xf32>
    %161 = vector.shape_cast %160 : vector<8xf32> to vector<8x1xf32>
    %162 = arith.mulf %159, %159 : vector<8x64xf32>
    %cst_92 = arith.constant dense<0.000000e+00> : vector<8xf32>
    %163 = vector.multi_reduction <add>, %162, %cst_92 [1] : vector<8x64xf32> to vector<8xf32>
    %164 = vector.shape_cast %163 : vector<8xf32> to vector<8x1xf32>
    %cst_93 = arith.constant 1.562500e-02 : f32
    %165 = vector.broadcast %cst_93 : f32 to vector<8x1xf32>
    %166 = arith.mulf %161, %165 : vector<8x1xf32>
    %cst_94 = arith.constant 1.562500e-02 : f32
    %167 = vector.broadcast %cst_94 : f32 to vector<8x1xf32>
    %168 = arith.mulf %164, %167 : vector<8x1xf32>
    %169 = arith.mulf %166, %166 : vector<8x1xf32>
    %170 = arith.subf %168, %169 : vector<8x1xf32>
    %cst_95 = arith.constant 0.000000e+00 : f32
    %171 = vector.broadcast %cst_95 : f32 to vector<8x1xf32>
    %172 = arith.maximumf %170, %171 : vector<8x1xf32>
    %cst_96 = arith.constant 9.99999974E-6 : f32
    %173 = vector.broadcast %cst_96 : f32 to vector<8x1xf32>
    %174 = arith.addf %172, %173 : vector<8x1xf32>
    %175 = math.rsqrt %174 : vector<8x1xf32>
    %176 = vector.broadcast %133 : f32 to vector<8x1xf32>
    %177 = arith.mulf %175, %176 : vector<8x1xf32>
    %178 = vector.broadcast %166 : vector<8x1xf32> to vector<8x64xf32>
    %179 = arith.subf %159, %178 : vector<8x64xf32>
    %180 = vector.broadcast %177 : vector<8x1xf32> to vector<8x64xf32>
    %181 = arith.mulf %179, %180 : vector<8x64xf32>
    %cst_97 = arith.constant 0.000000e+00 : f32
    %182 = vector.broadcast %cst_97 : f32 to vector<8x64xf32>
    %183 = arith.maximumf %181, %182 : vector<8x64xf32>
    %c0_98 = arith.constant 0 : index
    %c0_99 = arith.constant 0 : index
    %184 = vector.load %arg5[%c0_98, %c0_99] : memref<64x256xf32, #tpu.memory_space<vmem>>, vector<64x256xf32>
    %cst_100 = arith.constant dense<0.000000e+00> : vector<8x256xf32>
    %185 = tpu.matmul %183, %184, %cst_100 {dimension_numbers = #tpu.dot_dimension_numbers<[1], [0], [0], [1], [0, 0, 1, 1], [], []>} : vector<8x64xf32>, vector<64x256xf32>, vector<8x256xf32> -> vector<8x256xf32>
    %186 = arith.addf %158, %185 : vector<8x256xf32>
    %c0_101 = arith.constant 0 : index
    %c0_102 = arith.constant 0 : index
    %c0_103 = arith.constant 0 : index
    %187 = vector.load %arg9[%c0_101, %c0_102, %c0_103] : memref<2x8x256xf32, #tpu.memory_space<vmem>>, vector<1x8x256xf32>
    %188 = vector.shape_cast %187 : vector<1x8x256xf32> to vector<8x256xf32>
    %189 = vector.shape_cast %186 : vector<8x256xf32> to vector<1x8x256xf32>
    tpu.vector_store %arg9[%c0_101, %c0_102, %c0_103], %189 {strides = array<i32>} : memref<2x8x256xf32, #tpu.memory_space<vmem>>, vector<1x8x256xf32>,
    %190 = vector.extract_strided_slice %67 {offsets = [0, 256], sizes = [8, 256], strides = [1, 1]} : vector<8x512xf32> to vector<8x256xf32>
    %cst_104 = arith.constant dense<0.000000e+00> : vector<8xf32>
    %191 = vector.multi_reduction <add>, %190, %cst_104 [1] : vector<8x256xf32> to vector<8xf32>
    %192 = vector.shape_cast %191 : vector<8xf32> to vector<8x1xf32>
    %193 = arith.mulf %190, %190 : vector<8x256xf32>
    %cst_105 = arith.constant dense<0.000000e+00> : vector<8xf32>
    %194 = vector.multi_reduction <add>, %193, %cst_105 [1] : vector<8x256xf32> to vector<8xf32>
    %195 = vector.shape_cast %194 : vector<8xf32> to vector<8x1xf32>
    %cst_106 = arith.constant 3.906250e-03 : f32
    %196 = vector.broadcast %cst_106 : f32 to vector<8x1xf32>
    %197 = arith.mulf %192, %196 : vector<8x1xf32>
    %cst_107 = arith.constant 3.906250e-03 : f32
    %198 = vector.broadcast %cst_107 : f32 to vector<8x1xf32>
    %199 = arith.mulf %195, %198 : vector<8x1xf32>
    %200 = arith.mulf %197, %197 : vector<8x1xf32>
    %201 = arith.subf %199, %200 : vector<8x1xf32>
    %cst_108 = arith.constant 0.000000e+00 : f32
    %202 = vector.broadcast %cst_108 : f32 to vector<8x1xf32>
    %203 = arith.maximumf %201, %202 : vector<8x1xf32>
    %cst_109 = arith.constant 9.99999974E-6 : f32
    %204 = vector.broadcast %cst_109 : f32 to vector<8x1xf32>
    %205 = arith.addf %203, %204 : vector<8x1xf32>
    %206 = math.rsqrt %205 : vector<8x1xf32>
    %207 = vector.broadcast %132 : f32 to vector<8x1xf32>
    %208 = arith.mulf %206, %207 : vector<8x1xf32>
    %209 = vector.broadcast %197 : vector<8x1xf32> to vector<8x256xf32>
    %210 = arith.subf %190, %209 : vector<8x256xf32>
    %211 = vector.broadcast %208 : vector<8x1xf32> to vector<8x256xf32>
    %212 = arith.mulf %210, %211 : vector<8x256xf32>
    %cst_110 = arith.constant 0.000000e+00 : f32
    %213 = vector.broadcast %cst_110 : f32 to vector<8x256xf32>
    %214 = arith.maximumf %212, %213 : vector<8x256xf32>
    %215 = vector.extract_strided_slice %131 {offsets = [0, 64], sizes = [8, 64], strides = [1, 1]} : vector<8x128xf32> to vector<8x64xf32>
    %cst_111 = arith.constant dense<0.000000e+00> : vector<8xf32>
    %216 = vector.multi_reduction <add>, %215, %cst_111 [1] : vector<8x64xf32> to vector<8xf32>
    %217 = vector.shape_cast %216 : vector<8xf32> to vector<8x1xf32>
    %218 = arith.mulf %215, %215 : vector<8x64xf32>
    %cst_112 = arith.constant dense<0.000000e+00> : vector<8xf32>
    %219 = vector.multi_reduction <add>, %218, %cst_112 [1] : vector<8x64xf32> to vector<8xf32>
    %220 = vector.shape_cast %219 : vector<8xf32> to vector<8x1xf32>
    %cst_113 = arith.constant 1.562500e-02 : f32
    %221 = vector.broadcast %cst_113 : f32 to vector<8x1xf32>
    %222 = arith.mulf %217, %221 : vector<8x1xf32>
    %cst_114 = arith.constant 1.562500e-02 : f32
    %223 = vector.broadcast %cst_114 : f32 to vector<8x1xf32>
    %224 = arith.mulf %220, %223 : vector<8x1xf32>
    %225 = arith.mulf %222, %222 : vector<8x1xf32>
    %226 = arith.subf %224, %225 : vector<8x1xf32>
    %cst_115 = arith.constant 0.000000e+00 : f32
    %227 = vector.broadcast %cst_115 : f32 to vector<8x1xf32>
    %228 = arith.maximumf %226, %227 : vector<8x1xf32>
    %cst_116 = arith.constant 9.99999974E-6 : f32
    %229 = vector.broadcast %cst_116 : f32 to vector<8x1xf32>
    %230 = arith.addf %228, %229 : vector<8x1xf32>
    %231 = math.rsqrt %230 : vector<8x1xf32>
    %232 = vector.broadcast %133 : f32 to vector<8x1xf32>
    %233 = arith.mulf %231, %232 : vector<8x1xf32>
    %234 = vector.broadcast %222 : vector<8x1xf32> to vector<8x64xf32>
    %235 = arith.subf %215, %234 : vector<8x64xf32>
    %236 = vector.broadcast %233 : vector<8x1xf32> to vector<8x64xf32>
    %237 = arith.mulf %235, %236 : vector<8x64xf32>
    %cst_117 = arith.constant 0.000000e+00 : f32
    %238 = vector.broadcast %cst_117 : f32 to vector<8x64xf32>
    %239 = arith.maximumf %237, %238 : vector<8x64xf32>
    %c0_118 = arith.constant 0 : index
    %c0_119 = arith.constant 0 : index
    %240 = vector.load %arg5[%c0_118, %c0_119] : memref<64x256xf32, #tpu.memory_space<vmem>>, vector<64x256xf32>
    %cst_120 = arith.constant dense<0.000000e+00> : vector<8x256xf32>
    %241 = tpu.matmul %239, %240, %cst_120 {dimension_numbers = #tpu.dot_dimension_numbers<[1], [0], [0], [1], [0, 0, 1, 1], [], []>} : vector<8x64xf32>, vector<64x256xf32>, vector<8x256xf32> -> vector<8x256xf32>
    %242 = arith.addf %214, %241 : vector<8x256xf32>
    %c1_121 = arith.constant 1 : index
    %c0_122 = arith.constant 0 : index
    %c0_123 = arith.constant 0 : index
    %243 = vector.load %arg9[%c1_121, %c0_122, %c0_123] : memref<2x8x256xf32, #tpu.memory_space<vmem>>, vector<1x8x256xf32>
    %244 = vector.shape_cast %243 : vector<1x8x256xf32> to vector<8x256xf32>
    %245 = vector.shape_cast %242 : vector<8x256xf32> to vector<1x8x256xf32>
    tpu.vector_store %arg9[%c1_121, %c0_122, %c0_123], %245 {strides = array<i32>} : memref<2x8x256xf32, #tpu.memory_space<vmem>>, vector<1x8x256xf32>,
    return
  }
  func.func @transform_0(%arg0: i32) -> (i32, i32, i32) {
    %c0_i32 = arith.constant 0 : i32
    %c0_i32_0 = arith.constant 0 : i32
    %c0_i32_1 = arith.constant 0 : i32
    return %arg0, %c0_i32, %c0_i32_0 : i32, i32, i32
  }
  func.func @transform_1(%arg0: i32) -> (i32, i32, i32) {
    %c0_i32 = arith.constant 0 : i32
    %c0_i32_0 = arith.constant 0 : i32
    %c0_i32_1 = arith.constant 0 : i32
    return %arg0, %c0_i32, %c0_i32_0 : i32, i32, i32
  }
  func.func @transform_2(%arg0: i32) -> (i32, i32) {
    %c0_i32 = arith.constant 0 : i32
    %c0_i32_0 = arith.constant 0 : i32
    %c0_i32_1 = arith.constant 0 : i32
    return %c0_i32, %c0_i32_0 : i32, i32
  }
  func.func @transform_3(%arg0: i32) -> (i32, i32) {
    %c0_i32 = arith.constant 0 : i32
    %c0_i32_0 = arith.constant 0 : i32
    %c0_i32_1 = arith.constant 0 : i32
    return %c0_i32, %c0_i32_0 : i32, i32
  }
  func.func @transform_4(%arg0: i32) -> (i32, i32) {
    %c0_i32 = arith.constant 0 : i32
    %c0_i32_0 = arith.constant 0 : i32
    %c0_i32_1 = arith.constant 0 : i32
    return %c0_i32, %c0_i32_0 : i32, i32
  }
  func.func @transform_5(%arg0: i32) -> (i32, i32) {
    %c0_i32 = arith.constant 0 : i32
    %c0_i32_0 = arith.constant 0 : i32
    %c0_i32_1 = arith.constant 0 : i32
    return %c0_i32, %c0_i32_0 : i32, i32
  }
  func.func @transform_6(%arg0: i32) -> (i32, i32) {
    %c0_i32 = arith.constant 0 : i32
    %c0_i32_0 = arith.constant 0 : i32
    %c0_i32_1 = arith.constant 0 : i32
    return %c0_i32, %c0_i32_0 : i32, i32
  }
  func.func @transform_7(%arg0: i32) -> i32 {
    %c0_i32 = arith.constant 0 : i32
    %c0_i32_0 = arith.constant 0 : i32
    return %c0_i32 : i32
  }
  func.func @transform_8(%arg0: i32) -> (i32, i32, i32) {
    %c0_i32 = arith.constant 0 : i32
    %c0_i32_0 = arith.constant 0 : i32
    %c0_i32_1 = arith.constant 0 : i32
    return %arg0, %c0_i32, %c0_i32_0 : i32, i32, i32
  }
}

</mosaic_0001>

<bundles_post_ra>
// kernel: refine_block2_1_forward.1
= control target key start
LH: loop header
LB: loop body
LE: loop exit
PB: predicated region body
PF: predicated region fallthrough
CT: control target
= control target key end

     0   :  { %13 = vsyncpa [#allocation5], 0  ;;  %s1908_s0 = inlined_call_operand.vmem [shape: f32[2,4,256], index: 0, kind: input, shape index: {}]   ;;  %s1909_s1 = inlined_call_operand.vmem [shape: f32[2,8,64], index: 1, kind: input, shape index: {}]   ;;  %s1910_s2 = inlined_call_operand.vmem [shape: f32[8,64], index: 2, kind: input, shape index: {}]   ;;  %s1911_s3 = inlined_call_operand.vmem [shape: f32[8,64], index: 3, kind: input, shape index: {}]   ;;  %s1912_s4 = inlined_call_operand.vmem [shape: f32[64,256], index: 4, kind: input, shape index: {}]   ;;  %s1913_s5 = inlined_call_operand.vmem [shape: f32[2,256], index: 5, kind: input, shape index: {}]   ;;  %s1914_s6 = inlined_call_operand.vmem [shape: f32[2,64], index: 6, kind: input, shape index: {}]   ;;  %s1915_s7 = inlined_call_operand.vmem [shape: f32[2], index: 7, kind: input, shape index: {}]   ;;  %s1916_s8 = inlined_call_operand.vmem [shape: f32[2,8,256], index: 8, kind: output, shape index: {}]  }
   0x1   :  { %s34_s29 = sshll.u32 %s1915_s7, 4  ;;  %s35_s29 = int_to_ptr.vmem [resolvable:$true] %s34_s29 }
   0x2   :  { %s1347_s30 = scalar_lea.vmem %s35_s29, 16  ;;  %p1352_p1 = scmp.lt.s32.totalorder %s35_s29, %s35_s29 }
   0x3   :  { %p1348_p0 = scmp.ne.s32.totalorder %s35_s29, %s1347_s30  ;;  %p1353_p2 = scmp.lt.s32.totalorder %s1347_s30, %s1347_s30 }
   0x5   :  { %p1354_p3 = por %p1353_p2, %p1352_p1 }
   0x7   :  { %p1355_p4 = pnand %p1354_p3, %p1348_p0 }
   0x9   :  { %1358 = shalt.err (!%p1355_p4)
}
   0xa   :  { %s1361_s9 = smov [#allocation4]  }
   0xb   :  { %37 = dma.vmem_to_smem %s35_s29, 16, %s1361_s9, [#allocation5]  }
   0xc   :  { %1359 = dma.done.wait [#allocation5], 16  }
   0xd   :  { %1360 = vsyncadd [#allocation5], 4294967280 }
   0xe   :  { %41 = sfence }
   0xf   :  { %v72_v0 = vlaneseq  ;;  %vm42_vm0 = vcmask 1048440   ;;  %v1074_v1 = vld [vmem:[%s1913_s5 + $0x1] ss:$2 sm:$0x3]  ;;  %v1362_v3 = vmov 0.0   ;;  %v1073_v6 = vld [vmem:[%s1908_s0 + $0x8] sm:$0xff] }
  0x10   :  { %43 = vst.msk [vmem:[#allocation2] sm:$0xff] %vm42_vm0, %v1362_v3  ;;  %54 = vst.msk [vmem:[#allocation2 + $0x20] sm:$0xff] %vm42_vm0, %v1362_v3  ;;  %462 = vmatprep.mubr.f32.mxu0 %v1362_v3  ;;  %533 = vmatprep.mubr.f32.mxu1 %v1362_v3  ;;  %v65_v4 = vld [vmem:[%s1913_s5] ss:$2 sm:$0x3]  ;;  %v61_v10 = vcombine.high %v1073_v6, %v1073_v6  ;;  %vm44_vm1 = vcmask 138240  }
  0x11   :  { %v73_v2 = vshrl.u32 %v72_v0, 7  ;;  %46 = vst [vmem:[#allocation2 + $0x8] sm:$0xf0] %v1362_v3  ;;  %47 = vst [vmem:[#allocation2 + $0x10] sm:$0xf0] %v1362_v3  ;;  %v48_v5 = vld [vmem:[%s1908_s0] sm:$0xff] }
  0x12   :  { %56 = vst [vmem:[#allocation2 + $0x28] sm:$0xf0] %v1362_v3  ;;  %57 = vst [vmem:[#allocation2 + $0x30] sm:$0xf0] %v1362_v3  ;;  %v50_v9 = vcombine.high %v48_v5, %v48_v5  ;;  %s1363_s5 = smov 113   ;;  %s1364_s0 = smov 111  }
  0x13   :  { %v74_v7 = vsub.s32 0, %v73_v2  ;;  %v78_v8 = vsub.s32 1, %v73_v2  ;;  %52 = vst [vmem:[#allocation2 + $0x8] sm:$0xf] %v48_v5  ;;  %63 = vst [vmem:[#allocation2 + $0x28] sm:$0xf] %v1073_v6 }
  0x14   :  { %53 = vst [vmem:[#allocation2 + $0x10] sm:$0xf] %v50_v9  ;;  %64 = vst [vmem:[#allocation2 + $0x30] sm:$0xf] %v61_v10  ;;  %vm542_vm2 = vcmask 597504   ;;  %vm394_vm3 = vcmask 523264  }
  0x15   :  { %v155_v11 = vrot.slane %v1074_v1, %v74_v7  ;;  %v75_v12 = vrot.slane %v65_v4, %v74_v7  ;;  %45 = vst.msk [vmem:[#allocation2 + $0x18] sm:$0xff] %vm44_vm1, %v1362_v3  ;;  %55 = vst.msk [vmem:[#allocation2 + $0x38] sm:$0xff] %vm44_vm1, %v1362_v3  ;;  %v159_v13 = vrot.slane %v1074_v1, %v78_v8  ;;  %vm540_vm4 = vcmask 1048504   ;;  %v544_v15 = vld [vmem:[%s1909_s1] sm:$0xff]  ;;  %v1077_v16 = vld [vmem:[%s1909_s1 + $0x8] sm:$0xff]  ;;  %s1365_s21 = smov 127  }
  0x16   :  { %v79_v14 = vrot.slane %v65_v4, %v78_v8  ;;  %543 = vst.msk [vmem:[#allocation3 + $0x8] sm:$0xff] %vm542_vm2, %v1362_v3  ;;  %547 = vst.msk [vmem:[#allocation3 + $0x18] sm:$0xff] %vm542_vm2, %v1362_v3  ;;  %s1366_s1 = smov 1   ;;  %s1367_s22 = smov 15   ;;  %v1078_v17 = vld [vmem:[%s1914_s6] ss:$0 sm:$0xff] }
  0x17   :  { %160 = vrot.lane.b32.xlu1 %v155_v11, %s1363_s5  ;;  %80 = vrot.lane.b32.xlu0 %v75_v12, %s1364_s0  ;;  %541 = vst.msk [vmem:[#allocation3] sm:$0xff] %vm540_vm4, %v1362_v3  ;;  %546 = vst.msk [vmem:[#allocation3 + $0x10] sm:$0xff] %vm540_vm4, %v1362_v3  ;;  %s1368_s23 = smov 17   ;;  %v1079_v18 = vld [vmem:[%s1914_s6 + $0x1] ss:$0 sm:$0xff]  ;;  %s1369_s28 = smov 119  }
  0x18   :  { %545 = vst.msk [vmem:[#allocation3 + $0x8] sm:$0xff] %vm394_vm3, %v544_v15  ;;  %550 = vst.msk [vmem:[#allocation3 + $0x18] sm:$0xff] %vm394_vm3, %v1077_v16  ;;  %s1370_s29 = smov 121   ;;  %s1371_s30 = smov 7   ;;  %v1516_v28 = vld [vmem:[#allocation2] sm:$0xff]  ;;  %vm164_vm5 = vcmask 924672  }
  0x19   :  { %s1372_s6 = smov 9   ;;  %s1373_s9 = smov 16   ;;  %vm84_vm6 = vcmask 908288   ;;  %vm206_vm7 = vcmask 1039360   ;;  %vm226_vm8 = vcmask 7168   ;;  %vm184_vm9 = vcmask 121856  }
  0x1a   :  { %v1496_v20 = vld [vmem:[#allocation2 + $0x8] sm:$0xff]  ;;  %s1374_s10 = smov 112   ;;  %s1375_s11 = smov 8   ;;  %vm133_vm10 = vcmask 130048   ;;  %vm335_vm11 = vcmask 916480   ;;  %vm594_vm12 = vcmask 64512  }
  0x1b   :  { %162 = vrot.lane.b32.xlu1 %v159_v13, %s1363_s5  ;;  %82 = vrot.lane.b32.xlu0 %v79_v14, %s1364_s0  ;;  %v1498_v21 = vld [vmem:[#allocation2 + $0x10] sm:$0xff]  ;;  %s1376_s7 = smov 72   ;;  %v1532_v34 = vld [vmem:[#allocation2 + $0x28] sm:$0xff]  ;;  %s1377_s12 = smov 73   ;;  %vm603_vm13 = vcmask 588800   ;;  %vm575_vm14 = vcmask 72704  }
  0x1c   :  { %v1494_v19 = vld [vmem:[#allocation2 + $0x18] sm:$0xff]  ;;  %v1217_v22 = vpack.i.bf16 %v1498_v21, %v1496_v20  ;;  %v1534_v35 = vld [vmem:[#allocation2 + $0x30] sm:$0xff]  ;;  %s1378_s13 = smov 71   ;;  %s1379_s14 = smov 65   ;;  %vm584_vm15 = vcmask 596992   ;;  %vm659_vm0 = vcmask 531456  }
  0x1d   :  { %v1222_v23 = vpack.i.bf16 %v1494_v19, %v1498_v21  ;;  %v1569_v49 = vld [vmem:[#allocation2 + $0x38] sm:$0xff]  ;;  %s1380_s15 = smov 63   ;;  %s1381_s16 = smov 57   ;;  %vm625_vm2 = vcmask 56320   ;;  %vm634_vm4 = vcmask 580608  }
  0x1e   :  { %v1508_v24 = vld [vmem:[#allocation3] sm:$0xff]  ;;  %v1512_v26 = vld [vmem:[#allocation3 + $0x10] sm:$0xff]  ;;  %s1382_s17 = smov 56   ;;  %s1383_s18 = smov 120  }
  0x1f   :  { %204 = vrot.lane.b32.xlu1 %v79_v14, %s1365_s21  ;;  %202 = vrot.lane.b32.xlu0 %v75_v12, %s1365_s21  ;;  %v1510_v25 = vld [vmem:[#allocation3 + $0x8] sm:$0xff]  ;;  %v1514_v27 = vld [vmem:[#allocation3 + $0x18] sm:$0xff]  ;;  %s1384_s19 = smov 55  }
  0x20   :  { %v1227_v29 = vpack.i.bf16 %v1510_v25, %v1508_v24  ;;  %v1232_v30 = vpack.i.bf16 %v1514_v27, %v1512_v26 }
  0x23   :  { %247 = vrot.lane.b32.xlu1 %v159_v13, %s1366_s1  ;;  %245 = vrot.lane.b32.xlu0 %v155_v11, %s1366_s1 }
  0x27   :  { %290 = vrot.lane.b32.xlu1 %v79_v14, %s1367_s22  ;;  %288 = vrot.lane.b32.xlu0 %v75_v12, %s1367_s22 }
  0x2b   :  { %355 = vrot.lane.b32.xlu1 %v159_v13, %s1368_s23  ;;  %353 = vrot.lane.b32.xlu0 %v155_v11, %s1368_s23 }
  0x2f   :  { %560 = vrot.lane.b32.xlu0 %v1078_v17, %s1369_s28  ;;  %612 = vrot.lane.b32.xlu1 %v1079_v18, %s1370_s29 }
  0x33   :  { %638 = vrot.lane.b32.xlu0 %v1078_v17, %s1365_s21  ;;  %663 = vrot.lane.b32.xlu1 %v1079_v18, %s1366_s1 }
  0x37   :  { %677 = vrot.lane.b32.xlu0 %v1078_v17, %s1371_s30  ;;  %698 = vrot.lane.b32.xlu1 %v1079_v18, %s1372_s6 }
  0x3b   :  { %1218 = vrot.lane.b32.xlu1 %v1217_v22, %s1373_s9  ;;  %1223 = vrot.lane.b32.xlu0 %v1222_v23, %s1374_s10 }
  0x3f   :  { %329 = vrot.lane.b32.xlu0 %v1496_v20, %s1374_s10  ;;  %127 = vrot.lane.b32.xlu1 %v1516_v28, %s1373_s9 }
  0x43   :  { %1228 = vrot.lane.b32.xlu0 %v1227_v29, %s1375_s11  ;;  %1233 = vrot.lane.b32.xlu1 %v1232_v30, %s1376_s7 }
  0x89   :  { %v1526_v31 = vpop.permute.xlu1 %160  ;;  %v1528_v32 = vpop.permute.xlu0 %80 }
  0x8a   :  { %v89_v14 = vmul.f32 %v1528_v32, %v1516_v28  ;;  %v169_v16 = vmul.f32 %v1526_v31, %v1516_v28 }
  0x8d   :  { %v1530_v33 = vpop.permute.xlu1 %162  ;;  %v83_v36 = vpop.permute.xlu0 %82 }
  0x8e   :  { %v1539_v37 = vsel %vm164_vm5, %v1526_v31, %v1530_v33  ;;  %v1543_v38 = vmul.f32 %v1530_v33, %v1534_v35  ;;  %v85_v39 = vsel %vm84_vm6, %v1528_v32, %v83_v36  ;;  %v1555_v42 = vmul.f32 %v1534_v35, %v83_v36 }
  0x8f   :  { %v1549_v40 = vmul.f32 %v1539_v37, %v1532_v34  ;;  %v1552_v41 = vmul.f32 %v1532_v34, %v85_v39  ;;  %v90_v18 = vmul.f32 %v85_v39, %v1496_v20  ;;  %v91_v22 = vmul.f32 %v83_v36, %v1498_v21 }
  0x90   :  { %v170_v36 = vmul.f32 %v1539_v37, %v1496_v20 }
  0x91   :  { %v205_v43 = vpop.permute.xlu1 %204  ;;  %v1557_v44 = vpop.permute.xlu0 %202  ;;  %v1307_v45 = vpack.i.bf16 %v1543_v38, %v1549_v40  ;;  %v1297_v50 = vpack.i.bf16 %v1555_v42, %v1552_v41  ;;  %v1327_v40 = vpack.i.bf16 %v1569_v49, %v1534_v35 }
  0x92   :  { %v1562_v46 = vmul.f32 %v205_v43, %v1534_v35  ;;  %v207_v47 = vsel %vm206_vm7, %v1557_v44, %v205_v43  ;;  %v211_v15 = vmul.f32 %v1557_v44, %v1516_v28  ;;  %v213_v29 = vmul.f32 %v205_v43, %v1498_v21 }
  0x93   :  { %v1567_v48 = vmul.f32 %v207_v47, %v1532_v34  ;;  %v212_v30 = vmul.f32 %v207_v47, %v1496_v20  ;;  %v171_v43 = vmul.f32 %v1530_v33, %v1498_v21 }
  0x95   :  { %v248_v51 = vpop.permute.xlu1 %247  ;;  %v1573_v52 = vpop.permute.xlu0 %245  ;;  %v1312_v53 = vpack.i.bf16 %v1562_v46, %v1567_v48  ;;  %v1257_v47 = vpack.i.bf16 %v213_v29, %v212_v30 }
  0x96   :  { %v1578_v54 = vmul.f32 %v1569_v49, %v248_v51  ;;  %v249_v55 = vsel %vm226_vm8, %v1573_v52, %v248_v51  ;;  %v259_v38 = vmul.f32 %v1573_v52, %v1532_v34 }
  0x97   :  { %v1583_v56 = vmul.f32 %v249_v55, %v1534_v35 }
  0x99   :  { %v291_v57 = vpop.permute.xlu1 %290  ;;  %v1585_v58 = vpop.permute.xlu0 %288  ;;  %v1317_v59 = vpack.i.bf16 %v1578_v54, %v1583_v56 }
  0x9a   :  { %v1590_v60 = vmul.f32 %v291_v57, %v1569_v49  ;;  %v292_v61 = vsel %vm184_vm9, %v1585_v58, %v291_v57  ;;  %v296_v17 = vmul.f32 %v1585_v58, %v1496_v20 }
  0x9b   :  { %v1595_v62 = vmul.f32 %v292_v61, %v1534_v35 }
  0x9d   :  { %v356_v63 = vpop.permute.xlu1 %355  ;;  %v1597_v0 = vpop.permute.xlu0 %353  ;;  %v1322_v1 = vpack.i.bf16 %v1590_v60, %v1595_v62 }
  0x9e   :  { %v1602_v2 = vmul.f32 %v356_v63, %v1569_v49  ;;  %v357_v4 = vsel %vm44_vm1, %v1597_v0, %v356_v63  ;;  %v361_v28 = vmul.f32 %v1597_v0, %v1496_v20  ;;  %v364_v41 = vmul.f32 %v1597_v0, %v1532_v34 }
  0x9f   :  { %v1607_v5 = vmul.f32 %v357_v4, %v1534_v35 }
  0xa1   :  { %v561_v6 = vpop.permute.xlu0 %560  ;;  %v1332_v7 = vpack.i.bf16 %v1602_v2, %v1607_v5  ;;  %v613_v23 = vpop.permute.xlu1 %612 }
  0xa2   :  { %v563_v8 = vmul.f32 %v561_v6, %v1508_v24  ;;  %v564_v9 = vmul.f32 %v561_v6, %v1510_v25  ;;  %v567_v10 = vmul.f32 %v1512_v26, %v561_v6  ;;  %v568_v11 = vmul.f32 %v1514_v27, %v561_v6 }
  0xa3   :  { %v253_v6 = vmul.f32 %v1573_v52, %v1496_v20  ;;  %v618_v39 = vmul.f32 %v613_v23, %v1514_v27 }
  0xa4   :  { %v1237_v12 = vpack.i.bf16 %v564_v9, %v563_v8  ;;  %v1242_v13 = vpack.i.bf16 %v568_v11, %v567_v10  ;;  %v617_v8 = vmul.f32 %v613_v23, %v1512_v26  ;;  %v1247_v9 = vpack.i.bf16 %v91_v22, %v90_v18 }
  0xa5   :  { %v255_v11 = vmul.f32 %v248_v51, %v1494_v19  ;;  %v639_v20 = vpop.permute.xlu0 %638  ;;  %v615_v51 = vmul.f32 %v613_v23, %v1508_v24 }
  0xa6   :  { %1238 = vrot.lane.b32.xlu0 %v1237_v12, %s1372_s6  ;;  %1243 = vrot.lane.b32.xlu1 %v1242_v13, %s1377_s12  ;;  %v1272_v10 = vpack.i.bf16 %v618_v39, %v617_v8  ;;  %v254_v12 = vmul.f32 %v249_v55, %v1498_v21  ;;  %v298_v13 = vmul.f32 %v291_v57, %v1494_v19 }
  0xa7   :  { %v616_v55 = vmul.f32 %v613_v23, %v1510_v25  ;;  %v641_v57 = vmul.f32 %v639_v20, %v1508_v24  ;;  %v643_v18 = vmul.f32 %v639_v20, %v1512_v26  ;;  %v644_v22 = vmul.f32 %v639_v20, %v1514_v27 }
  0xa8   :  { %v1262_v37 = vpack.i.bf16 %v255_v11, %v254_v12 }
  0xa9   :  { %v678_v26 = vpop.permute.xlu0 %677 }
  0xaa   :  { %220 = vrot.lane.b32.xlu1 %v211_v15, %s1366_s1  ;;  %101 = vrot.lane.b32.xlu0 %v89_v14, %s1368_s23  ;;  %v297_v14 = vmul.f32 %v292_v61, %v1498_v21  ;;  %v1252_v15 = vpack.i.bf16 %v171_v43, %v170_v36  ;;  %v642_v61 = vmul.f32 %v639_v20, %v1510_v25 }
  0xab   :  { %v680_v30 = vmul.f32 %v678_v26, %v1510_v25 }
  0xac   :  { %v1282_v33 = vpack.i.bf16 %v298_v13, %v297_v14 }
  0xad   :  { %v1675_v43 = vpop.permute.xlu0 %1223 }
  0xae   :  { %305 = vrot.lane.b32.xlu1 %v296_v17, %s1363_s5  ;;  %178 = vrot.lane.b32.xlu0 %v169_v16, %s1367_s22  ;;  %v363_v16 = vmul.f32 %v356_v63, %v1494_v19  ;;  %v362_v17 = vmul.f32 %v357_v4, %v1498_v21  ;;  %v1267_v19 = vpack.i.bf16 %v616_v55, %v615_v51  ;;  %v664_v4 = vpop.permute.xlu1 %663 }
  0xaf   :  { %v1292_v21 = vpack.i.bf16 %v644_v22, %v643_v18  ;;  %v1277_v63 = vpack.i.bf16 %v642_v61, %v641_v57  ;;  %v666_v24 = vmul.f32 %v664_v4, %v1510_v25  ;;  %v667_v23 = vmul.f32 %v664_v4, %v1514_v27 }
  0xb0   :  { %v1287_v29 = vpack.i.bf16 %v363_v16, %v362_v17 }
  0xb2   :  { %370 = vrot.lane.b32.xlu1 %v361_v28, %s1364_s0  ;;  %265 = vrot.lane.b32.xlu0 %v253_v6, %s1365_s21  ;;  %v681_v6 = vmul.f32 %v678_v26, %v1514_v27  ;;  %v699_v28 = vpop.permute.xlu1 %698 }
  0xb3   :  { %v701_v8 = vmul.f32 %v699_v28, %v1510_v25  ;;  %v702_v39 = vmul.f32 %v699_v28, %v1514_v27  ;;  %v1225_v28 = vunpack.i.l.bf16 %v1675_v43 }
  0xb6   :  { %1258 = vrot.lane.b32.xlu1 %v1257_v47, %s1366_s1  ;;  %1248 = vrot.lane.b32.xlu0 %v1247_v9, %s1368_s23  ;;  %v1219_v36 = vpop.permute.xlu1 %1218  ;;  %v1677_v47 = vpop.permute.xlu0 %329 }
  0xb7   :  { %v1220_v16 = vunpack.i.l.bf16 %v1219_v36 }
  0xba   :  { %1273 = vrot.lane.b32.xlu1 %v1272_v10, %s1378_s13  ;;  %1253 = vrot.lane.b32.xlu0 %v1252_v15, %s1367_s22  ;;  %v128_v9 = vpop.permute.xlu1 %127  ;;  %v1679_v10 = vpop.permute.xlu0 %1228 }
  0xbb   :  { %v134_v61 = vsel %vm133_vm10, %v128_v9, %v1220_v16 }
  0xbe   :  { %1283 = vrot.lane.b32.xlu1 %v1282_v33, %s1363_s5  ;;  %1263 = vrot.lane.b32.xlu0 %v1262_v37, %s1365_s21  ;;  %v1681_v11 = vpop.permute.xlu1 %1233  ;;  %v1221_v37 = vunpack.i.h.bf16 %v1219_v36 }
  0xc0   :  { %v135_v18 = vsel %vm133_vm10, %v1220_v16, %v1221_v37  ;;  %v1236_v16 = vunpack.i.h.bf16 %v1681_v11 }
  0xc2   :  { %1288 = vrot.lane.b32.xlu1 %v1287_v29, %s1364_s0  ;;  %1268 = vrot.lane.b32.xlu0 %v1267_v19, %s1371_s30 }
  0xc6   :  { %1293 = vrot.lane.b32.xlu1 %v1292_v21, %s1379_s14  ;;  %1278 = vrot.lane.b32.xlu0 %v1277_v63, %s1366_s1 }
  0xca   :  { %673 = vrot.lane.b32.xlu1 %v667_v23, %s1380_s15  ;;  %669 = vrot.lane.b32.xlu0 %v666_v24, %s1365_s21 }
  0xce   :  { %687 = vrot.lane.b32.xlu1 %v681_v6, %s1381_s16  ;;  %683 = vrot.lane.b32.xlu0 %v680_v30, %s1370_s29  ;;  %v1226_v6 = vunpack.i.h.bf16 %v1675_v43 }
  0xd2   :  { %694 = vrot.lane.b32.xlu1 %v1514_v27, %s1382_s17  ;;  %691 = vrot.lane.b32.xlu0 %v1510_v25, %s1383_s18 }
  0xd6   :  { %708 = vrot.lane.b32.xlu1 %v702_v39, %s1384_s19  ;;  %704 = vrot.lane.b32.xlu0 %v701_v8, %s1369_s28  ;;  %v1231_v8 = vunpack.i.h.bf16 %v1679_v10  ;;  %v1230_v39 = vunpack.i.l.bf16 %v1679_v10 }
 0x118   :  { %v1683_v12 = vpop.permute.xlu0 %1238  ;;  %v1685_v13 = vpop.permute.xlu1 %1243 }
 0x11c   :  { %v221_v25 = vpop.permute.xlu1 %220  ;;  %v102_v27 = vpop.permute.xlu0 %101 }
 0x120   :  { %v306_v14 = vpop.permute.xlu1 %305  ;;  %v179_v15 = vpop.permute.xlu0 %178 }
 0x124   :  { %v1687_v20 = vpop.permute.xlu1 %370  ;;  %v266_v33 = vpop.permute.xlu0 %265 }
 0x128   :  { %v1259_v17 = vpop.permute.xlu1 %1258  ;;  %v1249_v51 = vpop.permute.xlu0 %1248 }
 0x129   :  { %v1251_v55 = vunpack.i.h.bf16 %v1249_v51  ;;  %v1250_v57 = vunpack.i.l.bf16 %v1249_v51  ;;  %v1261_v22 = vunpack.i.h.bf16 %v1259_v17  ;;  %v1260_v29 = vunpack.i.l.bf16 %v1259_v17 }
 0x12a   :  { %v1235_v17 = vunpack.i.l.bf16 %v1681_v11 }
 0x12b   :  { %v108_v19 = vsel %vm44_vm1, %v1250_v57, %v1251_v55  ;;  %v107_v21 = vsel %vm44_vm1, %v102_v27, %v1250_v57  ;;  %v228_v9 = vsel %vm226_vm8, %v1260_v29, %v1261_v22  ;;  %v227_v37 = vsel %vm226_vm8, %v221_v25, %v1260_v29 }
 0x12c   :  { %v1693_v63 = vpop.permute.xlu1 %1273  ;;  %v1254_v4 = vpop.permute.xlu0 %1253  ;;  %v1114_v24 = vpack.c.bf16 %v135_v18, %v108_v19  ;;  %v1116_v23 = vpack.c.bf16 %v134_v61, %v107_v21  ;;  %v1241_v21 = vunpack.i.h.bf16 %v1683_v12  ;;  %v1240_v22 = vunpack.i.l.bf16 %v1683_v12 }
 0x12d   :  { %v1256_v26 = vunpack.i.h.bf16 %v1254_v4  ;;  %v1255_v30 = vunpack.i.l.bf16 %v1254_v4  ;;  %v1245_v25 = vunpack.i.l.bf16 %v1685_v13 }
 0x12e   :  { %1115 = vmatprep.subr.bf16.mxu0 %v1114_v24 }
 0x12f   :  { %1117 = vmatpush1.bf16.msra.mxu0 %v1116_v23  ;;  %v186_v36 = vsel %vm184_vm9, %v1255_v30, %v1256_v26  ;;  %v185_v27 = vsel %vm184_vm9, %v179_v15, %v1255_v30  ;;  %v1246_v15 = vunpack.i.h.bf16 %v1685_v13 }
 0x130   :  { %v1284_v51 = vpop.permute.xlu1 %1283  ;;  %v1264_v43 = vpop.permute.xlu0 %1263  ;;  %v1118_v55 = vpack.c.bf16 %v228_v9, %v186_v36  ;;  %v1120_v57 = vpack.c.bf16 %v227_v37, %v185_v27  ;;  %v336_v36 = vsel %vm335_vm11, %v1677_v47, %v1225_v28  ;;  %v337_v27 = vsel %vm335_vm11, %v1225_v28, %v1226_v6 }
 0x131   :  { %v1286_v61 = vunpack.i.h.bf16 %v1284_v51  ;;  %v1285_v10 = vunpack.i.l.bf16 %v1284_v51  ;;  %v1266_v18 = vunpack.i.h.bf16 %v1264_v43  ;;  %v1265_v19 = vunpack.i.l.bf16 %v1264_v43 }
 0x132   :  { %1119 = vmatprep.subr.bf16.mxu0 %v1118_v55  ;;  %v595_v37 = vsel %vm594_vm12, %v1230_v39, %v1231_v8  ;;  %v604_v51 = vsel %vm603_vm13, %v1235_v17, %v1236_v16  ;;  %vm1386_vm12 = vmmov 0  }
 0x133   :  { %1121 = vmatpush1.bf16.msra.mxu0 %v1120_v57  ;;  %v272_v11 = vsel %vm206_vm7, %v1265_v19, %v1266_v18  ;;  %v312_v29 = vsel %vm164_vm5, %v1285_v10, %v1286_v61  ;;  %v271_v4 = vsel %vm206_vm7, %v266_v33, %v1265_v19  ;;  %v311_v24 = vsel %vm164_vm5, %v306_v14, %v1285_v10 }
 0x134   :  { %v1289_v23 = vpop.permute.xlu1 %1288  ;;  %v1269_v26 = vpop.permute.xlu0 %1268  ;;  %v1122_v30 = vpack.c.bf16 %v312_v29, %v272_v11  ;;  %v1124_v12 = vpack.c.bf16 %v311_v24, %v271_v4  ;;  %v576_v14 = vsel %vm575_vm14, %v1240_v22, %v1241_v21  ;;  %v585_v33 = vsel %vm584_vm15, %v1245_v25, %v1246_v15  ;;  %v1729_v15 = vld [vmem:[%s1910_s2] sm:$0xff] }
 0x135   :  { %v1291_v13 = vunpack.i.h.bf16 %v1289_v23  ;;  %v1290_v9 = vunpack.i.l.bf16 %v1289_v23  ;;  %v1271_v57 = vunpack.i.h.bf16 %v1269_v26  ;;  %v1270_v47 = vunpack.i.l.bf16 %v1269_v26 }
 0x136   :  { %1123 = vmatprep.subr.bf16.mxu0 %v1122_v30  ;;  %v587_v17 = vsel %vm394_vm3, %v576_v14, %v585_v33  ;;  %v1276_v19 = vunpack.i.h.bf16 %v1693_v63  ;;  %v1275_v21 = vunpack.i.l.bf16 %v1693_v63  ;;  %v1385_v29 = vmov 0.0|0.0  }
 0x137   :  { %1125 = vmatpush1.bf16.msra.mxu0 %v1124_v12  ;;  %v377_v43 = vsel %vm84_vm6, %v1290_v9, %v1291_v13  ;;  %v376_v55 = vsel %vm84_vm6, %v1687_v20, %v1290_v9  ;;  %v606_v4 = vsel %vm394_vm3, %v595_v37, %v604_v51  ;;  %v626_v24 = vsel %vm625_vm2, %v1270_v47, %v1271_v57 }
 0x138   :  { %v1294_v61 = vpop.permute.xlu1 %1293  ;;  %v1279_v10 = vpop.permute.xlu0 %1278  ;;  %v1126_v18 = vpack.c.bf16 %v377_v43, %v337_v27  ;;  %v1128_v6 = vpack.c.bf16 %v376_v55, %v336_v36  ;;  %v1147_v23 = vpack.c.bf16 %v606_v4, %v587_v17  ;;  %v635_v26 = vsel %vm634_vm4, %v1275_v21, %v1276_v19 }
 0x139   :  { %v1296_v28 = vunpack.i.h.bf16 %v1294_v61  ;;  %v1295_v8 = vunpack.i.l.bf16 %v1294_v61  ;;  %v1281_v39 = vunpack.i.h.bf16 %v1279_v10  ;;  %v1280_v16 = vunpack.i.l.bf16 %v1279_v10  ;;  %v712_v61 = vld [vmem:[%s1911_s3] sm:$0xff]  ;;  %s1387_s3 = smov 64  }
 0x13a   :  { %1127 = vmatprep.subr.bf16.mxu0 %v1126_v18  ;;  %v637_v36 = vsel %vm394_vm3, %v626_v24, %v635_v26  ;;  %v1302_v21 = vpack.i.bf16 %v1534_v35, %v1532_v34 }
 0x13b   :  { %v660_v20 = vsel %vm659_vm0, %v1295_v8, %v1296_v28  ;;  %v651_v22 = vsel %vm226_vm8, %v1280_v16, %v1281_v39  ;;  %1129 = vmatpush1.bf16.msra.mxu0 %v1128_v6 }
 0x13c   :  { %v674_v25 = vpop.permute.xlu1 %673  ;;  %v670_v11 = vpop.permute.xlu0 %669  ;;  %1146 = vmatprep.subr.bf16.mxu0 %v1385_v29  ;;  %v662_v63 = vsel %vm394_vm3, %v651_v22, %v660_v20  ;;  %v92_v20 = vld [vmem:[#allocation2 + $0x20] sm:$0xff] }
 0x13d   :  { %v1150_v13 = vpack.c.bf16 %v662_v63, %v637_v36  ;;  %v676_v27 = vsel %vm394_vm3, %v670_v11, %v674_v25  ;;  %v95_v22 = vmul.f32 %v92_v20, %v1528_v32  ;;  %v172_v25 = vmul.f32 %v1526_v31, %v92_v20 }
 0x13e   :  { %1075 = vmatmul.mubr.msk.f32.vlgmr.msra.gmra.mrb[0].mxu0 %vm394_vm3, %v1729_v15  ;;  %v214_v32 = vmul.f32 %v1557_v44, %v92_v20  ;;  %v299_v31 = vmul.f32 %v1585_v58, %v1532_v34 }
 0x13f   :  { %1148 = vmatpush3.bf16.msra.mxu0 %v1147_v23  ;;  %1111 = vmatprep.mubr.msk.f32.mxu0 %vm1386_vm12, %v1362_v3 }
 0x140   :  { %v688_v30 = vpop.permute.xlu1 %687  ;;  %v684_v12 = vpop.permute.xlu0 %683  ;;  %1149 = vmatprep.subr.bf16.mxu0 %v1385_v29 }
 0x141   :  { %v690_v9 = vsel %vm394_vm3, %v684_v12, %v688_v30 }
 0x142   :  { %v1153_v14 = vpack.c.bf16 %v690_v9, %v676_v27 }
 0x143   :  { %1151 = vmatpush3.bf16.msra.mxu0 %v1150_v13 }
 0x144   :  { %v695_v37 = vpop.permute.xlu1 %694  ;;  %v692_v51 = vpop.permute.xlu0 %691  ;;  %1152 = vmatprep.subr.bf16.mxu0 %v1385_v29 }
 0x145   :  { %v697_v55 = vsel %vm394_vm3, %v692_v51, %v695_v37 }
 0x147   :  { %1154 = vmatpush3.bf16.msra.mxu0 %v1153_v14 }
 0x148   :  { %v709_v33 = vpop.permute.xlu1 %708  ;;  %v705_v43 = vpop.permute.xlu0 %704  ;;  %1155 = vmatprep.subr.bf16.mxu0 %v1385_v29 }
 0x149   :  { %v711_v57 = vsel %vm394_vm3, %v705_v43, %v709_v33 }
 0x14a   :  { %v1156_v47 = vpack.c.bf16 %v711_v57, %v697_v55 }
 0x14c   :  { %1157 = vmatpush3.bf16.msra.mxu0 %v1156_v47 }
 0x14f   :  { %1112 = vmatmul.mubr.msk.f32.vlgmr.msra.gmra.mrb[2].mxu0 %vm394_vm3, %v712_v61 }
 0x150   :  { %1056 = vmatprep.mubr.f32.mxu0 %v1362_v3 }
 0x211   :  { %v1746_v10 = vpop.f32.mrb[0].mxu0 }
 0x212   :  { %v1748_v18 = vpop.f32.mrb[1].mxu0  ;;  %v791_v6 = vmul.f32 %v1746_v10, %v1746_v10 }
 0x213   :  { %v1754_v28 = vadd.f32 %v1748_v18, %v1746_v10  ;;  %v792_v8 = vmul.f32 %v1748_v18, %v1748_v18 }
 0x215   :  { %v1758_v39 = vadd.f32 %v792_v8, %v791_v6 }
 0x222   :  { %v1760_v16 = vpop.f32.mrb[2].mxu0 }
 0x223   :  { %947 = vrot.lane.b32.xlu0 %v1760_v16, %s1387_s3  ;;  %v1113_v17 = vpop.f32.mrb[3].mxu0  ;;  %v814_v19 = vmul.f32 %v1760_v16, %v1760_v16 }
 0x225   :  { %954 = vrot.lane.b32.xlu1 %v814_v19, %s1387_s3  ;;  %v815_v56 = vsel %vm394_vm3, %v814_v19, 0.0 }
 0x227   :  { %1298 = vrot.lane.b32.xlu0 %v1297_v50, %s1368_s23  ;;  %v811_v50 = vsel %vm394_vm3, %v1760_v16, 0.0 }
 0x229   :  { %1303 = vrot.lane.b32.xlu1 %v1302_v21, %s1373_s9 }
 0x22b   :  { %114 = vrot.lane.b32.xlu0 %v95_v22, %s1368_s23 }
 0x22d   :  { %141 = vrot.lane.b32.xlu1 %v92_v20, %s1373_s9 }
 0x22f   :  { %1308 = vrot.lane.b32.xlu0 %v1307_v45, %s1367_s22 }
 0x231   :  { %1313 = vrot.lane.b32.xlu1 %v1312_v53, %s1366_s1 }
 0x233   :  { %192 = vrot.lane.b32.xlu0 %v172_v25, %s1367_s22 }
 0x235   :  { %234 = vrot.lane.b32.xlu1 %v214_v32, %s1366_s1 }
 0x237   :  { %1318 = vrot.lane.b32.xlu0 %v1317_v59, %s1365_s21 }
 0x239   :  { %1323 = vrot.lane.b32.xlu1 %v1322_v1, %s1363_s5 }
 0x23b   :  { %278 = vrot.lane.b32.xlu0 %v259_v38, %s1365_s21 }
 0x23d   :  { %318 = vrot.lane.b32.xlu1 %v299_v31, %s1363_s5 }
 0x23f   :  { %1328 = vrot.lane.b32.xlu0 %v1327_v40, %s1374_s10  ;;  %v831_v40 = vld [vmem:[%s1912_s4 + $0x8] sm:$0xff] }
 0x241   :  { %1333 = vrot.lane.b32.xlu1 %v1332_v7, %s1364_s0 }
 0x243   :  { %343 = vrot.lane.b32.xlu0 %v1532_v34, %s1374_s10 }
 0x245   :  { %383 = vrot.lane.b32.xlu1 %v364_v41, %s1364_s0  ;;  %v833_v41 = vld [vmem:[%s1912_s4 + $0x18] sm:$0xff] }
 0x295   :  { %v948_v42 = vpop.permute.xlu0 %947 }
 0x296   :  { %v950_v35 = vsel %vm394_vm3, %v948_v42, 0.0  ;;  %v830_v42 = vld [vmem:[%s1912_s4] sm:$0xff] }
 0x297   :  { %951 = vadd.xlane.f32.xlu0 %v950_v35  ;;  %v955_v44 = vpop.permute.xlu1 %954 }
 0x298   :  { %v957_v45 = vsel %vm394_vm3, %v955_v44, 0.0 }
 0x299   :  { %v1299_v46 = vpop.permute.xlu0 %1298  ;;  %958 = vadd.xlane.f32.xlu1 %v957_v45  ;;  %v1158_v45 = vpack.c.bf16 %v833_v41, %v831_v40 }
 0x29a   :  { %v1301_v48 = vunpack.i.h.bf16 %v1299_v46  ;;  %v1300_v49 = vunpack.i.l.bf16 %v1299_v46  ;;  %v832_v46 = vld [vmem:[%s1912_s4 + $0x10] sm:$0xff] }
 0x29b   :  { %v1304_v52 = vpop.permute.xlu1 %1303  ;;  %812 = vadd.xlane.f32.xlu0 %v811_v50  ;;  %1175 = vmatprep.subr.bf16.mxu0 %v1158_v45 }
 0x29c   :  { %v1306_v53 = vunpack.i.h.bf16 %v1304_v52  ;;  %v1305_v34 = vunpack.i.l.bf16 %v1304_v52  ;;  %v121_v58 = vsel %vm44_vm1, %v1300_v49, %v1301_v48  ;;  %v835_v48 = vld [vmem:[%s1912_s4 + $0x28] sm:$0xff] }
 0x29d   :  { %v115_v54 = vpop.permute.xlu0 %114 }
 0x29e   :  { %v148_v59 = vsel %vm133_vm10, %v1305_v34, %v1306_v53  ;;  %v120_v0 = vsel %vm44_vm1, %v115_v54, %v1300_v49  ;;  %v837_v49 = vld [vmem:[%s1912_s4 + $0x38] sm:$0xff]  ;;  %v1160_v53 = vpack.c.bf16 %v832_v46, %v830_v42 }
 0x29f   :  { %v142_v60 = vpop.permute.xlu1 %141  ;;  %816 = vadd.xlane.f32.xlu0 %v815_v56  ;;  %v1130_v62 = vpack.c.bf16 %v148_v59, %v121_v58  ;;  %v1162_v54 = vpack.c.bf16 %v837_v49, %v835_v48  ;;  %v834_v56 = vld [vmem:[%s1912_s4 + $0x20] sm:$0xff]  ;;  %v836_v58 = vld [vmem:[%s1912_s4 + $0x30] sm:$0xff] }
 0x2a0   :  { %v147_v1 = vsel %vm133_vm10, %v142_v60, %v1305_v34  ;;  %v839_v60 = vld [vmem:[%s1912_s4 + $0x48] sm:$0xff]  ;;  %1177 = vmatpush1.bf16.msra.mxu0 %v1160_v53 }
 0x2a1   :  { %v1309_v2 = vpop.permute.xlu0 %1308  ;;  %1131 = vmatprep.subr.bf16.mxu1 %v1130_v62  ;;  %v1132_v5 = vpack.c.bf16 %v147_v1, %v120_v0  ;;  %v841_v62 = vld [vmem:[%s1912_s4 + $0x58] sm:$0xff]  ;;  %1179 = vmatprep.subr.bf16.mxu0 %v1162_v54  ;;  %v1164_v0 = vpack.c.bf16 %v836_v58, %v834_v56 }
 0x2a2   :  { %v1311_v7 = vunpack.i.h.bf16 %v1309_v2  ;;  %v1310_v11 = vunpack.i.l.bf16 %v1309_v2  ;;  %v1166_v1 = vpack.c.bf16 %v841_v62, %v839_v60  ;;  %v838_v2 = vld [vmem:[%s1912_s4 + $0x40] sm:$0xff] }
 0x2a3   :  { %v1314_v29 = vpop.permute.xlu1 %1313  ;;  %1133 = vmatpush1.bf16.msra.mxu1 %v1132_v5  ;;  %789 = vadd.xlane.f32.xlu0 %v1754_v28  ;;  %v840_v5 = vld [vmem:[%s1912_s4 + $0x50] sm:$0xff] }
 0x2a4   :  { %v1316_v4 = vunpack.i.h.bf16 %v1314_v29  ;;  %v1315_v24 = vunpack.i.l.bf16 %v1314_v29  ;;  %v199_v63 = vsel %vm184_vm9, %v1310_v11, %v1311_v7  ;;  %1181 = vmatpush1.bf16.msra.mxu0 %v1164_v0  ;;  %v1168_v7 = vpack.c.bf16 %v840_v5, %v838_v2  ;;  %v845_v29 = vld [vmem:[%s1912_s4 + $0x78] sm:$0xff] }
 0x2a5   :  { %v193_v23 = vpop.permute.xlu0 %192  ;;  %1183 = vmatprep.subr.bf16.mxu0 %v1166_v1 }
 0x2a6   :  { %v241_v26 = vsel %vm226_vm8, %v1315_v24, %v1316_v4  ;;  %v198_v36 = vsel %vm184_vm9, %v193_v23, %v1310_v11  ;;  %v843_v11 = vld [vmem:[%s1912_s4 + $0x68] sm:$0xff] }
 0x2a7   :  { %v235_v30 = vpop.permute.xlu1 %234  ;;  %v1134_v12 = vpack.c.bf16 %v241_v26, %v199_v63  ;;  %v1170_v4 = vpack.c.bf16 %v845_v29, %v843_v11 }
 0x2a8   :  { %v240_v13 = vsel %vm226_vm8, %v235_v30, %v1315_v24  ;;  %1185 = vmatpush1.bf16.msra.mxu0 %v1168_v7  ;;  %v844_v24 = vld [vmem:[%s1912_s4 + $0x70] sm:$0xff] }
 0x2a9   :  { %v1136_v9 = vpack.c.bf16 %v240_v13, %v198_v36  ;;  %v1319_v27 = vpop.permute.xlu0 %1318  ;;  %1135 = vmatprep.subr.bf16.mxu1 %v1134_v12  ;;  %1187 = vmatprep.subr.bf16.mxu0 %v1170_v4 }
 0x2aa   :  { %v1321_v37 = vunpack.i.h.bf16 %v1319_v27  ;;  %v1320_v51 = vunpack.i.l.bf16 %v1319_v27 }
 0x2ab   :  { %v1324_v14 = vpop.permute.xlu1 %1323  ;;  %1137 = vmatpush1.bf16.msra.mxu1 %v1136_v9 }
 0x2ac   :  { %v1326_v33 = vunpack.i.h.bf16 %v1324_v14  ;;  %v1325_v43 = vunpack.i.l.bf16 %v1324_v14  ;;  %v285_v57 = vsel %vm206_vm7, %v1320_v51, %v1321_v37 }
 0x2ad   :  { %v279_v55 = vpop.permute.xlu0 %278 }
 0x2ae   :  { %v325_v47 = vsel %vm164_vm5, %v1325_v43, %v1326_v33  ;;  %v284_v28 = vsel %vm206_vm7, %v279_v55, %v1320_v51 }
 0x2af   :  { %v319_v61 = vpop.permute.xlu1 %318  ;;  %v1138_v6 = vpack.c.bf16 %v325_v47, %v285_v57 }
 0x2b0   :  { %v324_v8 = vsel %vm164_vm5, %v319_v61, %v1325_v43 }
 0x2b1   :  { %v1140_v17 = vpack.c.bf16 %v324_v8, %v284_v28  ;;  %1139 = vmatprep.subr.bf16.mxu1 %v1138_v6  ;;  %v1329_v19 = vpop.permute.xlu0 %1328 }
 0x2b2   :  { %v1331_v21 = vunpack.i.h.bf16 %v1329_v19  ;;  %v1330_v20 = vunpack.i.l.bf16 %v1329_v19 }
 0x2b3   :  { %v1334_v22 = vpop.permute.xlu1 %1333  ;;  %1141 = vmatpush1.bf16.msra.mxu1 %v1140_v17 }
 0x2b4   :  { %v1336_v25 = vunpack.i.h.bf16 %v1334_v22  ;;  %v1335_v32 = vunpack.i.l.bf16 %v1334_v22  ;;  %v350_v38 = vsel %vm335_vm11, %v1330_v20, %v1331_v21 }
 0x2b5   :  { %v344_v31 = vpop.permute.xlu0 %343 }
 0x2b6   :  { %v349_v35 = vsel %vm335_vm11, %v344_v31, %v1330_v20  ;;  %v390_v44 = vsel %vm84_vm6, %v1335_v32, %v1336_v25 }
 0x2b7   :  { %v384_v50 = vpop.permute.xlu1 %383  ;;  %v1142_v52 = vpack.c.bf16 %v390_v44, %v350_v38 }
 0x2b8   :  { %v389_v34 = vsel %vm84_vm6, %v384_v50, %v1335_v32 }
 0x2b9   :  { %v1144_v59 = vpack.c.bf16 %v389_v34, %v349_v35  ;;  %1143 = vmatprep.subr.bf16.mxu1 %v1142_v52 }
 0x2bb   :  { %1145 = vmatpush1.bf16.msra.mxu1 %v1144_v59 }
 0x2bc   :  { %1159 = vmatprep.subr.bf16.mxu1 %v1158_v45 }
 0x2be   :  { %1076 = vmatmul.mubr.msk.f32.vlgmr.msra.gmra.mrb[0].mxu1 %vm394_vm3, %v1729_v15  ;;  %v842_v15 = vld [vmem:[%s1912_s4 + $0x60] sm:$0xff]  ;;  %s1081_s4 = sld [smem:[#allocation4 + $0x1]] }
 0x2bf   :  { %1161 = vmatpush1.bf16.msra.mxu1 %v1160_v53  ;;  %913 = vmatprep.mubr.f32.mxu1 %v1362_v3  ;;  %v1172_v3 = vpack.c.bf16 %v844_v24, %v842_v15 }
 0x2c0   :  { %1163 = vmatprep.subr.bf16.mxu1 %v1162_v54 }
 0x2c1   :  { %1189 = vmatpush1.bf16.msra.mxu0 %v1172_v3 }
 0x2c3   :  { %1165 = vmatpush1.bf16.msra.mxu1 %v1164_v0 }
 0x2c4   :  { %1167 = vmatprep.subr.bf16.mxu1 %v1166_v1  ;;  %v825_v47 = vstv %s1081_s4 }
 0x2c7   :  { %1169 = vmatpush1.bf16.msra.mxu1 %v1168_v7 }
 0x2c8   :  { %1171 = vmatprep.subr.bf16.mxu1 %v1170_v4 }
 0x2cb   :  { %1173 = vmatpush1.bf16.msra.mxu1 %v1172_v3 }
 0x324   :  { %v952_v23 = vpop.xlane.xlu0 %951 }
 0x325   :  { %v960_v63 = vmul.f32 0.015625, %v952_v23 }
 0x326   :  { %v959_v26 = vpop.xlane.xlu1 %958 }
 0x327   :  { %v962_v30 = vmul.f32 %v960_v63, %v960_v63  ;;  %v961_v12 = vmul.f32 0.015625, %v959_v26  ;;  %v968_v6 = vsub.f32 %v1760_v16, %v960_v63 }
 0x328   :  { %v813_v36 = vpop.xlane.xlu0 %812 }
 0x329   :  { %v963_v13 = vsub.f32 %v961_v12, %v962_v30  ;;  %v818_v9 = vmul.f32 0.015625, %v813_v36 }
 0x32b   :  { %v964_v27 = vmax.f32 %v963_v13, 0.0  ;;  %v820_v14 = vmul.f32 %v818_v9, %v818_v9  ;;  %v827_v21 = vsub.f32 %v1760_v16, %v818_v9 }
 0x32c   :  { %v817_v37 = vpop.xlane.xlu0 %816 }
 0x32d   :  { %v965_v51 = vadd.f32 1e-05, %v964_v27  ;;  %v819_v33 = vmul.f32 0.015625, %v817_v37 }
 0x32f   :  { %1339 = vrsqrt.f32 %v965_v51  ;;  %v821_v43 = vsub.f32 %v819_v33, %v820_v14 }
 0x330   :  { %v790_v45 = vpop.xlane.xlu0 %789 }
 0x331   :  { %v822_v55 = vmax.f32 %v821_v43, 0.0  ;;  %v796_v48 = vmul.f32 0.00390625, %v790_v45 }
 0x333   :  { %v823_v57 = vadd.f32 1e-05, %v822_v55  ;;  %v798_v34 = vmul.f32 %v796_v48, %v796_v48  ;;  %v805_v11 = vsub.f32 %v1746_v10, %v796_v48  ;;  %v806_v29 = vsub.f32 %v1748_v18, %v796_v48 }
 0x335   :  { %1341 = vrsqrt.f32 %v823_v57 }
 0x339   :  { %v1340_v61 = vpop.eup %1339 }
 0x33a   :  { %v967_v28 = vmul.f32 %v1340_v61, %v825_v47 }
 0x33c   :  { %v969_v8 = vmul.f32 %v968_v6, %v967_v28 }
 0x33e   :  { %v970_v17 = vmax.f32 %v969_v8, 0.0 }
 0x33f   :  { %v1342_v19 = vpop.eup %1341 }
 0x340   :  { %988 = vrot.lane.b32.xlu1 %v970_v17, %s1387_s3  ;;  %v826_v20 = vmul.f32 %v1342_v19, %v825_v47  ;;  %s786_s3 = sld [smem:[#allocation4]] }
 0x342   :  { %v828_v22 = vmul.f32 %v827_v21, %v826_v20 }
 0x344   :  { %v829_v25 = vmax.f32 %v828_v22, 0.0 }
 0x346   :  { %1082 = vmatmul.mubr.msk.f32.vlgmr.msra.gmra.mrb[2].mxu1 %vm394_vm3, %v829_v25  ;;  %v803_v5 = vstv %s786_s3 }
 0x391   :  { %v535_v32 = vpop.f32.mrb[0].mxu1 }
 0x392   :  { %v537_v38 = vpop.f32.mrb[1].mxu1  ;;  %v927_v31 = vmul.f32 %v535_v32, %v535_v32 }
 0x393   :  { %v924_v40 = vadd.f32 %v537_v38, %v535_v32  ;;  %v928_v41 = vmul.f32 %v537_v38, %v537_v38 }
 0x395   :  { %925 = vadd.xlane.f32.xlu0 %v924_v40  ;;  %v929_v42 = vadd.f32 %v928_v41, %v927_v31 }
 0x399   :  { %794 = vadd.xlane.f32.xlu0 %v1758_v39 }
 0x39d   :  { %930 = vadd.xlane.f32.xlu0 %v929_v42 }
 0x3b2   :  { %v989_v35 = vpop.permute.xlu1 %988 }
 0x3b3   :  { %1083 = vmatmul.mubr.msk.f32.vlgmr.msra.gmra.mrb[4].mxu0 %vm394_vm3, %v989_v35 }
 0x419   :  { %v915_v16 = vpop.f32.mrb[2].mxu1 }
 0x41a   :  { %v917_v44 = vpop.f32.mrb[3].mxu1 }
 0x422   :  { %v926_v46 = vpop.xlane.xlu0 %925 }
 0x423   :  { %v932_v49 = vmul.f32 0.00390625, %v926_v46 }
 0x425   :  { %v940_v50 = vsub.f32 %v535_v32, %v932_v49  ;;  %v941_v52 = vsub.f32 %v537_v38, %v932_v49  ;;  %v934_v58 = vmul.f32 %v932_v49, %v932_v49 }
 0x426   :  { %v795_v53 = vpop.xlane.xlu0 %794 }
 0x427   :  { %v797_v54 = vmul.f32 0.00390625, %v795_v53 }
 0x429   :  { %v799_v56 = vsub.f32 %v797_v54, %v798_v34 }
 0x42a   :  { %v931_v59 = vpop.xlane.xlu0 %930 }
 0x42b   :  { %v800_v60 = vmax.f32 %v799_v56, 0.0  ;;  %v933_v39 = vmul.f32 0.00390625, %v931_v59 }
 0x42d   :  { %v801_v62 = vadd.f32 1e-05, %v800_v60  ;;  %v935_v0 = vsub.f32 %v933_v39, %v934_v58 }
 0x42f   :  { %1343 = vrsqrt.f32 %v801_v62  ;;  %v936_v1 = vmax.f32 %v935_v0, 0.0 }
 0x431   :  { %v937_v2 = vadd.f32 1e-05, %v936_v1 }
 0x433   :  { %1345 = vrsqrt.f32 %v937_v2 }
 0x439   :  { %v1344_v7 = vpop.eup %1343 }
 0x43a   :  { %v804_v4 = vmul.f32 %v1344_v7, %v803_v5 }
 0x43c   :  { %v807_v15 = vmul.f32 %v805_v11, %v804_v4  ;;  %v808_v24 = vmul.f32 %v806_v29, %v804_v4 }
 0x43d   :  { %v1346_v3 = vpop.eup %1345 }
 0x43e   :  { %v809_v23 = vmax.f32 %v807_v15, 0.0  ;;  %v810_v63 = vmax.f32 %v808_v24, 0.0  ;;  %v939_v26 = vmul.f32 %v1346_v3, %v803_v5 }
 0x440   :  { %v920_v30 = vadd.f32 %v915_v16, %v809_v23  ;;  %v921_v12 = vadd.f32 %v917_v44, %v810_v63  ;;  %v942_v36 = vmul.f32 %v940_v50, %v939_v26  ;;  %v943_v13 = vmul.f32 %v941_v52, %v939_v26 }
 0x442   :  { %922 = vst [vmem:[%s1916_s8] sm:$0xff] %v920_v30  ;;  %923 = vst [vmem:[%s1916_s8 + $0x8] sm:$0xff] %v921_v12  ;;  %v944_v10 = vmax.f32 %v942_v36, 0.0  ;;  %v945_v9 = vmax.f32 %v943_v13, 0.0 }
 0x486   :  { %v1058_v18 = vpop.f32.mrb[4].mxu0 }
 0x487   :  { %v1063_v27 = vadd.f32 %v1058_v18, %v944_v10  ;;  %v1060_v37 = vpop.f32.mrb[5].mxu0 }
 0x488   :  { %v1064_v51 = vadd.f32 %v1060_v37, %v945_v9 }
 0x489   :  { %1084 = vst [vmem:[%s1916_s8 + $0x10] sm:$0xff] %v1063_v27 }
 0x48a   :  { %1085 = vst [vmem:[%s1916_s8 + $0x18] sm:$0xff] %v1064_v51 }
 0x48b   :  { %1072 = vsyncpa [#allocation5], 1 }

</bundles_post_ra>
